<compile_context>
chip_gen: v6e
topology: v6e:2x2x1
jax: 0.10.0
libtpu: 0.0.40
codegen_flags: <defaults>
</compile_context>

<pallas_src>
import jax
import jax.numpy as jnp
from jax.experimental import pallas as pl
from jax.experimental.pallas import tpu as pltpu

# ---------------------------------------------------------------------------
# Model configuration (mirrors VAE_PI.__init__ defaults)
# ---------------------------------------------------------------------------
INPUT_C = 16
LATENT_DIM = 8
HIDDEN_DIM = [32, 64, 128, 256, 512]
BN_EPS = 1e-5
LEAKY_SLOPE = 0.01  # nn.LeakyReLU default negative_slope

# Layer table: (name, in_dim, out_dim, has_batchnorm), in forward order.
# fc_mu and fc_var are fused into one Linear(512 -> 2*LATENT_DIM).
LAYERS = [
    ("enc1", INPUT_C, HIDDEN_DIM[0], True),
    ("enc2", HIDDEN_DIM[0], HIDDEN_DIM[1], True),
    ("enc3", HIDDEN_DIM[1], HIDDEN_DIM[2], True),
    ("enc4", HIDDEN_DIM[2], HIDDEN_DIM[3], True),
    ("enc5", HIDDEN_DIM[3], HIDDEN_DIM[4], True),
    ("fc_muvar", HIDDEN_DIM[4], 2 * LATENT_DIM, False),
    ("dec_in", LATENT_DIM, HIDDEN_DIM[4], False),
    ("dec1", HIDDEN_DIM[4], HIDDEN_DIM[3], True),
    ("dec2", HIDDEN_DIM[3], HIDDEN_DIM[2], True),
    ("dec3", HIDDEN_DIM[2], HIDDEN_DIM[1], True),
    ("dec4", HIDDEN_DIM[1], HIDDEN_DIM[0], True),
    ("final", HIDDEN_DIM[0], INPUT_C, False),
]
ENC_NAMES = ["enc1", "enc2", "enc3", "enc4", "enc5"]
DEC_NAMES = ["dec1", "dec2", "dec3", "dec4"]

WIDE_OUTS = (512, 256, 128)   # layers whose out-dim is already lane-dense
NARROW_WIDTH = 128            # merged slab width for out-dims 64 / 32 / 16
XE_WIDTH = 128                # packed [x | eps] input width
EPS_OFF = 64                  # eps lane offset inside the packed input
OUT_WIDTH = 128               # lane-padded packed output width


def _round_up(x, m):
    return ((x + m - 1) // m) * m


# ---------------------------------------------------------------------------
# Static packing layouts (shared by wrapper-side packer and the kernel)
# ---------------------------------------------------------------------------
def _build_weight_layout():
    """Group weights by slab; concat along rows. Narrow out-dims share one
    128-lane slab (each weight zero-padded in lanes to 128)."""
    rows = {g: 0 for g in list(WIDE_OUTS) + ["narrow"]}
    layout = {}    # name -> (group, row_offset, in_dim, out_dim)
    for name, din, dout, _ in LAYERS:
        group = dout if dout in WIDE_OUTS else "narrow"
        off = rows[group]
        # bf16 sublane tile is 16 rows: static row slices must stay tile-aligned.
        assert off % 16 == 0, f"slab row offset {off} for {name} not 16-aligned"
        layout[name] = (group, off, din, dout)
        rows[group] = off + din
    return layout, rows


W_LAYOUT, SLAB_ROWS = _build_weight_layout()


def _build_vec_layout():
    """All biases / gammas / betas in one f32 vector, 128-lane aligned offsets."""
    off = 0
    layout = {}
    for name, _din, dout, has_bn in LAYERS:
        ent = {"b": off}
        off += _round_up(dout, 128)
        if has_bn:
            ent["g"] = off
            off += _round_up(dout, 128)
            ent["bt"] = off
            off += _round_up(dout, 128)
        layout[name] = ent
    return layout, off


VEC_LAYOUT, VEC_LEN = _build_vec_layout()   # VEC_LEN = 6144 (24 KiB f32)


# ---------------------------------------------------------------------------
# Kernel
# ---------------------------------------------------------------------------
def vae_pi_kernel(xe_ref, s512_ref, s256_ref, s128_ref, snarrow_ref, vec_ref,
                  out_ref):
    wide_refs = {512: s512_ref, 256: s256_ref, 128: s128_ref}

    def linear(h, name):
        group, roff, din, dout = W_LAYOUT[name]
        hb = h.astype(jnp.bfloat16)
        if group == "narrow":
            # lane-dense (din, 128) load; padded lanes are zero -> slice result.
            w = snarrow_ref[roff:roff + din, :]
            y = jnp.dot(hb, w, preferred_element_type=jnp.float32)[:, :dout]
        else:
            w = wide_refs[group][roff:roff + din, :]        # (din, dout) bf16
            y = jnp.dot(hb, w, preferred_element_type=jnp.float32)
        b_off = VEC_LAYOUT[name]["b"]
        return y + vec_ref[:, b_off:b_off + dout]

    def bn_lrelu(h, name):
        """BatchNorm1d (training mode, batch stats, biased var) -> LeakyReLU."""
        dout = W_LAYOUT[name][3]
        g = vec_ref[:, VEC_LAYOUT[name]["g"]:VEC_LAYOUT[name]["g"] + dout]
        bt = vec_ref[:, VEC_LAYOUT[name]["bt"]:VEC_LAYOUT[name]["bt"] + dout]
        mean = jnp.mean(h, axis=0, keepdims=True)
        c = h - mean
        var = jnp.mean(c * c, axis=0, keepdims=True)
        h = c * jax.lax.rsqrt(var + BN_EPS) * g + bt
        return jnp.where(h > 0, h, LEAKY_SLOPE * h)

    # packed input: x in lanes [0, INPUT_C), eps in lanes [EPS_OFF, EPS_OFF+LAT)
    h = xe_ref[:, 0:INPUT_C]
    eps = xe_ref[:, EPS_OFF:EPS_OFF + LATENT_DIM]

    # ---- encoder: 5 x (Linear -> BN -> LeakyReLU) ----
    for name in ENC_NAMES:
        h = bn_lrelu(linear(h, name), name)

    # ---- fused fc_mu / fc_var: one matmul ----
    muvar = linear(h, "fc_muvar")                           # (B, 2*latent) f32
    mu = muvar[:, :LATENT_DIM]
    log_var = muvar[:, LATENT_DIM:2 * LATENT_DIM]

    # ---- reparameterize: z = eps * exp(0.5 * log_var) + mu ----
    z = eps * jnp.exp(0.5 * log_var) + mu

    # ---- decoder_input (plain Linear) ----
    h = linear(z, "dec_in")

    # ---- decoder: 4 x (Linear -> BN -> LeakyReLU) ----
    for name in DEC_NAMES:
        h = bn_lrelu(linear(h, name), name)

    # ---- final layer: Linear -> Sigmoid ----
    recon = jax.nn.sigmoid(linear(h, "final"))

    # Lane-padded packed output: [recon (16) | mu (8) | log_var (8) | zeros].
    # Full lane-dense zero store, then direct slab stores (no concatenate).
    out_ref[...] = jnp.zeros_like(out_ref)
    out_ref[:, 0:INPUT_C] = recon
    out_ref[:, INPUT_C:INPUT_C + 2 * LATENT_DIM] = muvar


# ---------------------------------------------------------------------------
# Parameter initialization (deterministic, PyTorch-Linear-style uniform)
# ---------------------------------------------------------------------------
def _init_linear(key, fan_in, fan_out):
    bound = 1.0 / (fan_in ** 0.5)
    kw, kb = jax.random.split(key)
    w = jax.random.uniform(kw, (fan_in, fan_out), jnp.float32, -bound, bound)
    b = jax.random.uniform(kb, (1, fan_out), jnp.float32, -bound, bound)
    return w, b


def init_params(key):
    """Raw f32 parameters, per layer: w [in,out], b [1,out], (gamma, beta)."""
    keys = iter(jax.random.split(key, len(LAYERS) + 2))
    raw = {}
    for name, din, dout, has_bn in LAYERS:
        if name == "fc_muvar":
            # mirror the two separate PyTorch Linears, then fuse
            w_mu, b_mu = _init_linear(next(keys), din, LATENT_DIM)
            w_var, b_var = _init_linear(next(keys), din, LATENT_DIM)
            w = jnp.concatenate([w_mu, w_var], axis=1)
            b = jnp.concatenate([b_mu, b_var], axis=1)
        else:
            w, b = _init_linear(next(keys), din, dout)
        ent = {"w": w, "b": b}
        if has_bn:
            ent["g"] = jnp.ones((1, dout), jnp.float32)
            ent["bt"] = jnp.zeros((1, dout), jnp.float32)
        raw[name] = ent
    return raw


def pack_params(raw):
    """Pack raw params into 4 bf16 weight slabs + 1 f32 bias/BN vector."""
    wide = {g: [] for g in WIDE_OUTS}
    narrow = []
    for name, _din, dout, _ in LAYERS:
        w = raw[name]["w"]
        if dout in WIDE_OUTS:
            wide[dout].append(w)
        else:
            narrow.append(jnp.pad(w, ((0, 0), (0, NARROW_WIDTH - dout))))
    slabs = tuple(
        jnp.concatenate(wide[g], axis=0).astype(jnp.bfloat16) for g in WIDE_OUTS
    ) + (jnp.concatenate(narrow, axis=0).astype(jnp.bfloat16),)

    # bias / BN vector: 128-lane aligned segments, LAYERS order (b, g, bt)
    segs = []
    for name, _din, dout, has_bn in LAYERS:
        for k in (("b", "g", "bt") if has_bn else ("b",)):
            seg = raw[name][k]
            segs.append(jnp.pad(seg, ((0, 0), (0, _round_up(dout, 128) - dout))))
    vec = jnp.concatenate(segs, axis=1)
    assert vec.shape == (1, VEC_LEN)
    return vec, slabs


# ---------------------------------------------------------------------------
# Wrapper
# ---------------------------------------------------------------------------
_MM_FLOPS_PER_ROW = 2 * sum(din * dout for _, din, dout, _ in LAYERS)
_TRANSC_PER_ROW = LATENT_DIM + INPUT_C                     # reparam exp + sigmoid
_BN_RSQRT = sum(dout for _, _, dout, bn in LAYERS if bn)   # rsqrt vectors


@jax.jit
def vae_pi_forward(x, eps, vec, s512, s256, s128, snarrow):
    batch = x.shape[0]

    # Pack x and eps into one lane-aligned (B, 128) input -> single DMA.
    xe = jnp.zeros((batch, XE_WIDTH), jnp.float32)
    xe = xe.at[:, :INPUT_C].set(x)
    xe = xe.at[:, EPS_OFF:EPS_OFF + LATENT_DIM].set(eps)

    operands = (xe, s512, s256, s128, snarrow, vec)
    bytes_accessed = int(
        sum(a.size * a.dtype.itemsize for a in operands) + batch * OUT_WIDTH * 4
    )
    cost = pl.CostEstimate(
        flops=_MM_FLOPS_PER_ROW * batch,
        transcendentals=_TRANSC_PER_ROW * batch + _BN_RSQRT,
        bytes_accessed=bytes_accessed,
    )

    vmem = pl.BlockSpec(memory_space=pltpu.MemorySpace.VMEM)
    packed = pl.pallas_call(
        vae_pi_kernel,
        out_shape=jax.ShapeDtypeStruct((batch, OUT_WIDTH), jnp.float32),
        in_specs=[vmem] * len(operands),
        out_specs=vmem,
        cost_estimate=cost,
    )(*operands)

    recon = packed[:, :INPUT_C]
    mu = packed[:, INPUT_C:INPUT_C + LATENT_DIM]
    log_var = packed[:, INPUT_C + LATENT_DIM:INPUT_C + 2 * LATENT_DIM]
    # forward returns [decode(z), x, mu, log_var]
    return recon, x, mu, log_var


# ---------------------------------------------------------------------------
# Main
# ---------------------------------------------------------------------------
if __name__ == "__main__":
    key = jax.random.PRNGKey(0)
    k_x, k_eps, k_params = jax.random.split(key, 3)

    BATCH = 8
    x = jax.random.normal(k_x, (BATCH, INPUT_C), jnp.float32)
    # torch.randn_like(std) in reparameterize -> explicit deterministic normal
    eps = jax.random.normal(k_eps, (BATCH, LATENT_DIM), jnp.float32)

    raw_params = init_params(k_params)
    vec, slabs = pack_params(raw_params)

    recon, x_out, mu, log_var = vae_pi_forward(x, eps, vec, *slabs)
    jax.block_until_ready((recon, x_out, mu, log_var))

    assert recon.shape == (BATCH, INPUT_C)
    assert x_out.shape == (BATCH, INPUT_C)
    assert mu.shape == (BATCH, LATENT_DIM)
    assert log_var.shape == (BATCH, LATENT_DIM)
    assert bool(jnp.all(jnp.isfinite(recon)))
    assert bool(jnp.all(jnp.isfinite(mu)))
    assert bool(jnp.all(jnp.isfinite(log_var)))
    assert bool(jnp.all(recon >= 0.0)) and bool(jnp.all(recon <= 1.0))

    print("KERNEL_OK")
</pallas_src>

<mosaic_0001>
module attributes {stable_mosaic.version = 11 : i64} {
  func.func @vae_pi_kernel(%arg0: memref<8x128xf32, #tpu.memory_space<vmem>>, %arg1: memref<264x512xbf16, #tpu.memory_space<vmem>>, %arg2: memref<640x256xbf16, #tpu.memory_space<vmem>>, %arg3: memref<320x128xbf16, #tpu.memory_space<vmem>>, %arg4: memref<784x128xbf16, #tpu.memory_space<vmem>>, %arg5: memref<1x6144xf32, #tpu.memory_space<vmem>>, %arg6: memref<8x128xf32, #tpu.memory_space<vmem>>) attributes {dimension_semantics = [], scalar_prefetch = 0 : i64, scratch_operands = 0 : i64, tpu.core_type = #tpu.core_type<tc>} {
    %c0 = arith.constant 0 : index
    %c0_0 = arith.constant 0 : index
    %0 = vector.load %arg0[%c0, %c0_0] : memref<8x128xf32, #tpu.memory_space<vmem>>, vector<8x16xf32>
    %c0_1 = arith.constant 0 : index
    %c64 = arith.constant 64 : index
    %1 = vector.load %arg0[%c0_1, %c64] : memref<8x128xf32, #tpu.memory_space<vmem>>, vector<8x8xf32>
    %2 = arith.truncf %0 : vector<8x16xf32> to vector<8x16xbf16>
    %c0_2 = arith.constant 0 : index
    %c0_3 = arith.constant 0 : index
    %3 = vector.load %arg4[%c0_2, %c0_3] : memref<784x128xbf16, #tpu.memory_space<vmem>>, vector<16x128xbf16>
    %cst = arith.constant dense<0.000000e+00> : vector<8x128xf32>
    %4 = tpu.matmul %2, %3, %cst {dimension_numbers = #tpu.dot_dimension_numbers<[1], [0], [0], [1], [0, 0, 1, 1], [], []>} : vector<8x16xbf16>, vector<16x128xbf16>, vector<8x128xf32> -> vector<8x128xf32>
    %5 = vector.extract_strided_slice %4 {offsets = [0, 0], sizes = [8, 32], strides = [1, 1]} : vector<8x128xf32> to vector<8x32xf32>
    %c0_4 = arith.constant 0 : index
    %c0_5 = arith.constant 0 : index
    %6 = vector.load %arg5[%c0_4, %c0_5] : memref<1x6144xf32, #tpu.memory_space<vmem>>, vector<1x32xf32>
    %7 = vector.broadcast %6 : vector<1x32xf32> to vector<8x32xf32>
    %8 = arith.addf %5, %7 : vector<8x32xf32>
    %c0_6 = arith.constant 0 : index
    %c128 = arith.constant 128 : index
    %9 = vector.load %arg5[%c0_6, %c128] : memref<1x6144xf32, #tpu.memory_space<vmem>>, vector<1x32xf32>
    %c0_7 = arith.constant 0 : index
    %c256 = arith.constant 256 : index
    %10 = vector.load %arg5[%c0_7, %c256] : memref<1x6144xf32, #tpu.memory_space<vmem>>, vector<1x32xf32>
    %cst_8 = arith.constant dense<0.000000e+00> : vector<32xf32>
    %11 = vector.multi_reduction <add>, %8, %cst_8 [0] : vector<8x32xf32> to vector<32xf32>
    %12 = vector.shape_cast %11 : vector<32xf32> to vector<1x32xf32>
    %cst_9 = arith.constant 8.000000e+00 : f32
    %13 = vector.broadcast %cst_9 : f32 to vector<1x32xf32>
    %14 = arith.divf %12, %13 : vector<1x32xf32>
    %15 = vector.broadcast %14 : vector<1x32xf32> to vector<8x32xf32>
    %16 = arith.subf %8, %15 : vector<8x32xf32>
    %17 = arith.mulf %16, %16 : vector<8x32xf32>
    %cst_10 = arith.constant dense<0.000000e+00> : vector<32xf32>
    %18 = vector.multi_reduction <add>, %17, %cst_10 [0] : vector<8x32xf32> to vector<32xf32>
    %19 = vector.shape_cast %18 : vector<32xf32> to vector<1x32xf32>
    %cst_11 = arith.constant 8.000000e+00 : f32
    %20 = vector.broadcast %cst_11 : f32 to vector<1x32xf32>
    %21 = arith.divf %19, %20 : vector<1x32xf32>
    %cst_12 = arith.constant 9.99999974E-6 : f32
    %22 = vector.broadcast %cst_12 : f32 to vector<1x32xf32>
    %23 = arith.addf %21, %22 : vector<1x32xf32>
    %24 = math.rsqrt %23 : vector<1x32xf32>
    %25 = vector.broadcast %24 : vector<1x32xf32> to vector<8x32xf32>
    %26 = arith.mulf %16, %25 : vector<8x32xf32>
    %27 = vector.broadcast %9 : vector<1x32xf32> to vector<8x32xf32>
    %28 = arith.mulf %26, %27 : vector<8x32xf32>
    %29 = vector.broadcast %10 : vector<1x32xf32> to vector<8x32xf32>
    %30 = arith.addf %28, %29 : vector<8x32xf32>
    %cst_13 = arith.constant 0.000000e+00 : f32
    %31 = vector.broadcast %cst_13 : f32 to vector<8x32xf32>
    %32 = arith.cmpf ogt, %30, %31 : vector<8x32xf32>
    %cst_14 = arith.constant 0.00999999977 : f32
    %33 = vector.broadcast %cst_14 : f32 to vector<8x32xf32>
    %34 = arith.mulf %33, %30 : vector<8x32xf32>
    %35 = arith.select %32, %30, %34 : vector<8x32xi1>, vector<8x32xf32>
    %36 = arith.truncf %35 : vector<8x32xf32> to vector<8x32xbf16>
    %c16 = arith.constant 16 : index
    %c0_15 = arith.constant 0 : index
    %37 = vector.load %arg4[%c16, %c0_15] : memref<784x128xbf16, #tpu.memory_space<vmem>>, vector<32x128xbf16>
    %cst_16 = arith.constant dense<0.000000e+00> : vector<8x128xf32>
    %38 = tpu.matmul %36, %37, %cst_16 {dimension_numbers = #tpu.dot_dimension_numbers<[1], [0], [0], [1], [0, 0, 1, 1], [], []>} : vector<8x32xbf16>, vector<32x128xbf16>, vector<8x128xf32> -> vector<8x128xf32>
    %39 = vector.extract_strided_slice %38 {offsets = [0, 0], sizes = [8, 64], strides = [1, 1]} : vector<8x128xf32> to vector<8x64xf32>
    %c0_17 = arith.constant 0 : index
    %c384 = arith.constant 384 : index
    %40 = vector.load %arg5[%c0_17, %c384] : memref<1x6144xf32, #tpu.memory_space<vmem>>, vector<1x64xf32>
    %41 = vector.broadcast %40 : vector<1x64xf32> to vector<8x64xf32>
    %42 = arith.addf %39, %41 : vector<8x64xf32>
    %c0_18 = arith.constant 0 : index
    %c512 = arith.constant 512 : index
    %43 = vector.load %arg5[%c0_18, %c512] : memref<1x6144xf32, #tpu.memory_space<vmem>>, vector<1x64xf32>
    %c0_19 = arith.constant 0 : index
    %c640 = arith.constant 640 : index
    %44 = vector.load %arg5[%c0_19, %c640] : memref<1x6144xf32, #tpu.memory_space<vmem>>, vector<1x64xf32>
    %cst_20 = arith.constant dense<0.000000e+00> : vector<64xf32>
    %45 = vector.multi_reduction <add>, %42, %cst_20 [0] : vector<8x64xf32> to vector<64xf32>
    %46 = vector.shape_cast %45 : vector<64xf32> to vector<1x64xf32>
    %cst_21 = arith.constant 8.000000e+00 : f32
    %47 = vector.broadcast %cst_21 : f32 to vector<1x64xf32>
    %48 = arith.divf %46, %47 : vector<1x64xf32>
    %49 = vector.broadcast %48 : vector<1x64xf32> to vector<8x64xf32>
    %50 = arith.subf %42, %49 : vector<8x64xf32>
    %51 = arith.mulf %50, %50 : vector<8x64xf32>
    %cst_22 = arith.constant dense<0.000000e+00> : vector<64xf32>
    %52 = vector.multi_reduction <add>, %51, %cst_22 [0] : vector<8x64xf32> to vector<64xf32>
    %53 = vector.shape_cast %52 : vector<64xf32> to vector<1x64xf32>
    %cst_23 = arith.constant 8.000000e+00 : f32
    %54 = vector.broadcast %cst_23 : f32 to vector<1x64xf32>
    %55 = arith.divf %53, %54 : vector<1x64xf32>
    %cst_24 = arith.constant 9.99999974E-6 : f32
    %56 = vector.broadcast %cst_24 : f32 to vector<1x64xf32>
    %57 = arith.addf %55, %56 : vector<1x64xf32>
    %58 = math.rsqrt %57 : vector<1x64xf32>
    %59 = vector.broadcast %58 : vector<1x64xf32> to vector<8x64xf32>
    %60 = arith.mulf %50, %59 : vector<8x64xf32>
    %61 = vector.broadcast %43 : vector<1x64xf32> to vector<8x64xf32>
    %62 = arith.mulf %60, %61 : vector<8x64xf32>
    %63 = vector.broadcast %44 : vector<1x64xf32> to vector<8x64xf32>
    %64 = arith.addf %62, %63 : vector<8x64xf32>
    %cst_25 = arith.constant 0.000000e+00 : f32
    %65 = vector.broadcast %cst_25 : f32 to vector<8x64xf32>
    %66 = arith.cmpf ogt, %64, %65 : vector<8x64xf32>
    %cst_26 = arith.constant 0.00999999977 : f32
    %67 = vector.broadcast %cst_26 : f32 to vector<8x64xf32>
    %68 = arith.mulf %67, %64 : vector<8x64xf32>
    %69 = arith.select %66, %64, %68 : vector<8x64xi1>, vector<8x64xf32>
    %70 = arith.truncf %69 : vector<8x64xf32> to vector<8x64xbf16>
    %c0_27 = arith.constant 0 : index
    %c0_28 = arith.constant 0 : index
    %71 = vector.load %arg3[%c0_27, %c0_28] : memref<320x128xbf16, #tpu.memory_space<vmem>>, vector<64x128xbf16>
    %cst_29 = arith.constant dense<0.000000e+00> : vector<8x128xf32>
    %72 = tpu.matmul %70, %71, %cst_29 {dimension_numbers = #tpu.dot_dimension_numbers<[1], [0], [0], [1], [0, 0, 1, 1], [], []>} : vector<8x64xbf16>, vector<64x128xbf16>, vector<8x128xf32> -> vector<8x128xf32>
    %c0_30 = arith.constant 0 : index
    %c768 = arith.constant 768 : index
    %73 = vector.load %arg5[%c0_30, %c768] : memref<1x6144xf32, #tpu.memory_space<vmem>>, vector<1x128xf32>
    %74 = vector.broadcast %73 : vector<1x128xf32> to vector<8x128xf32>
    %75 = arith.addf %72, %74 : vector<8x128xf32>
    %c0_31 = arith.constant 0 : index
    %c896 = arith.constant 896 : index
    %76 = vector.load %arg5[%c0_31, %c896] : memref<1x6144xf32, #tpu.memory_space<vmem>>, vector<1x128xf32>
    %c0_32 = arith.constant 0 : index
    %c1024 = arith.constant 1024 : index
    %77 = vector.load %arg5[%c0_32, %c1024] : memref<1x6144xf32, #tpu.memory_space<vmem>>, vector<1x128xf32>
    %cst_33 = arith.constant dense<0.000000e+00> : vector<128xf32>
    %78 = vector.multi_reduction <add>, %75, %cst_33 [0] : vector<8x128xf32> to vector<128xf32>
    %79 = vector.shape_cast %78 : vector<128xf32> to vector<1x128xf32>
    %cst_34 = arith.constant 8.000000e+00 : f32
    %80 = vector.broadcast %cst_34 : f32 to vector<1x128xf32>
    %81 = arith.divf %79, %80 : vector<1x128xf32>
    %82 = vector.broadcast %81 : vector<1x128xf32> to vector<8x128xf32>
    %83 = arith.subf %75, %82 : vector<8x128xf32>
    %84 = arith.mulf %83, %83 : vector<8x128xf32>
    %cst_35 = arith.constant dense<0.000000e+00> : vector<128xf32>
    %85 = vector.multi_reduction <add>, %84, %cst_35 [0] : vector<8x128xf32> to vector<128xf32>
    %86 = vector.shape_cast %85 : vector<128xf32> to vector<1x128xf32>
    %cst_36 = arith.constant 8.000000e+00 : f32
    %87 = vector.broadcast %cst_36 : f32 to vector<1x128xf32>
    %88 = arith.divf %86, %87 : vector<1x128xf32>
    %cst_37 = arith.constant 9.99999974E-6 : f32
    %89 = vector.broadcast %cst_37 : f32 to vector<1x128xf32>
    %90 = arith.addf %88, %89 : vector<1x128xf32>
    %91 = math.rsqrt %90 : vector<1x128xf32>
    %92 = vector.broadcast %91 : vector<1x128xf32> to vector<8x128xf32>
    %93 = arith.mulf %83, %92 : vector<8x128xf32>
    %94 = vector.broadcast %76 : vector<1x128xf32> to vector<8x128xf32>
    %95 = arith.mulf %93, %94 : vector<8x128xf32>
    %96 = vector.broadcast %77 : vector<1x128xf32> to vector<8x128xf32>
    %97 = arith.addf %95, %96 : vector<8x128xf32>
    %cst_38 = arith.constant 0.000000e+00 : f32
    %98 = vector.broadcast %cst_38 : f32 to vector<8x128xf32>
    %99 = arith.cmpf ogt, %97, %98 : vector<8x128xf32>
    %cst_39 = arith.constant 0.00999999977 : f32
    %100 = vector.broadcast %cst_39 : f32 to vector<8x128xf32>
    %101 = arith.mulf %100, %97 : vector<8x128xf32>
    %102 = arith.select %99, %97, %101 : vector<8x128xi1>, vector<8x128xf32>
    %103 = arith.truncf %102 : vector<8x128xf32> to vector<8x128xbf16>
    %c0_40 = arith.constant 0 : index
    %c0_41 = arith.constant 0 : index
    %104 = vector.load %arg2[%c0_40, %c0_41] : memref<640x256xbf16, #tpu.memory_space<vmem>>, vector<128x256xbf16>
    %cst_42 = arith.constant dense<0.000000e+00> : vector<8x256xf32>
    %105 = tpu.matmul %103, %104, %cst_42 {dimension_numbers = #tpu.dot_dimension_numbers<[1], [0], [0], [1], [0, 0, 1, 1], [], []>} : vector<8x128xbf16>, vector<128x256xbf16>, vector<8x256xf32> -> vector<8x256xf32>
    %c0_43 = arith.constant 0 : index
    %c1152 = arith.constant 1152 : index
    %106 = vector.load %arg5[%c0_43, %c1152] : memref<1x6144xf32, #tpu.memory_space<vmem>>, vector<1x256xf32>
    %107 = vector.broadcast %106 : vector<1x256xf32> to vector<8x256xf32>
    %108 = arith.addf %105, %107 : vector<8x256xf32>
    %c0_44 = arith.constant 0 : index
    %c1408 = arith.constant 1408 : index
    %109 = vector.load %arg5[%c0_44, %c1408] : memref<1x6144xf32, #tpu.memory_space<vmem>>, vector<1x256xf32>
    %c0_45 = arith.constant 0 : index
    %c1664 = arith.constant 1664 : index
    %110 = vector.load %arg5[%c0_45, %c1664] : memref<1x6144xf32, #tpu.memory_space<vmem>>, vector<1x256xf32>
    %cst_46 = arith.constant dense<0.000000e+00> : vector<256xf32>
    %111 = vector.multi_reduction <add>, %108, %cst_46 [0] : vector<8x256xf32> to vector<256xf32>
    %112 = vector.shape_cast %111 : vector<256xf32> to vector<1x256xf32>
    %cst_47 = arith.constant 8.000000e+00 : f32
    %113 = vector.broadcast %cst_47 : f32 to vector<1x256xf32>
    %114 = arith.divf %112, %113 : vector<1x256xf32>
    %115 = vector.broadcast %114 : vector<1x256xf32> to vector<8x256xf32>
    %116 = arith.subf %108, %115 : vector<8x256xf32>
    %117 = arith.mulf %116, %116 : vector<8x256xf32>
    %cst_48 = arith.constant dense<0.000000e+00> : vector<256xf32>
    %118 = vector.multi_reduction <add>, %117, %cst_48 [0] : vector<8x256xf32> to vector<256xf32>
    %119 = vector.shape_cast %118 : vector<256xf32> to vector<1x256xf32>
    %cst_49 = arith.constant 8.000000e+00 : f32
    %120 = vector.broadcast %cst_49 : f32 to vector<1x256xf32>
    %121 = arith.divf %119, %120 : vector<1x256xf32>
    %cst_50 = arith.constant 9.99999974E-6 : f32
    %122 = vector.broadcast %cst_50 : f32 to vector<1x256xf32>
    %123 = arith.addf %121, %122 : vector<1x256xf32>
    %124 = math.rsqrt %123 : vector<1x256xf32>
    %125 = vector.broadcast %124 : vector<1x256xf32> to vector<8x256xf32>
    %126 = arith.mulf %116, %125 : vector<8x256xf32>
    %127 = vector.broadcast %109 : vector<1x256xf32> to vector<8x256xf32>
    %128 = arith.mulf %126, %127 : vector<8x256xf32>
    %129 = vector.broadcast %110 : vector<1x256xf32> to vector<8x256xf32>
    %130 = arith.addf %128, %129 : vector<8x256xf32>
    %cst_51 = arith.constant 0.000000e+00 : f32
    %131 = vector.broadcast %cst_51 : f32 to vector<8x256xf32>
    %132 = arith.cmpf ogt, %130, %131 : vector<8x256xf32>
    %cst_52 = arith.constant 0.00999999977 : f32
    %133 = vector.broadcast %cst_52 : f32 to vector<8x256xf32>
    %134 = arith.mulf %133, %130 : vector<8x256xf32>
    %135 = arith.select %132, %130, %134 : vector<8x256xi1>, vector<8x256xf32>
    %136 = arith.truncf %135 : vector<8x256xf32> to vector<8x256xbf16>
    %c0_53 = arith.constant 0 : index
    %c0_54 = arith.constant 0 : index
    %137 = vector.load %arg1[%c0_53, %c0_54] : memref<264x512xbf16, #tpu.memory_space<vmem>>, vector<256x512xbf16>
    %cst_55 = arith.constant dense<0.000000e+00> : vector<8x512xf32>
    %138 = tpu.matmul %136, %137, %cst_55 {dimension_numbers = #tpu.dot_dimension_numbers<[1], [0], [0], [1], [0, 0, 1, 1], [], []>} : vector<8x256xbf16>, vector<256x512xbf16>, vector<8x512xf32> -> vector<8x512xf32>
    %c0_56 = arith.constant 0 : index
    %c1920 = arith.constant 1920 : index
    %139 = vector.load %arg5[%c0_56, %c1920] : memref<1x6144xf32, #tpu.memory_space<vmem>>, vector<1x512xf32>
    %140 = vector.broadcast %139 : vector<1x512xf32> to vector<8x512xf32>
    %141 = arith.addf %138, %140 : vector<8x512xf32>
    %c0_57 = arith.constant 0 : index
    %c2432 = arith.constant 2432 : index
    %142 = vector.load %arg5[%c0_57, %c2432] : memref<1x6144xf32, #tpu.memory_space<vmem>>, vector<1x512xf32>
    %c0_58 = arith.constant 0 : index
    %c2944 = arith.constant 2944 : index
    %143 = vector.load %arg5[%c0_58, %c2944] : memref<1x6144xf32, #tpu.memory_space<vmem>>, vector<1x512xf32>
    %cst_59 = arith.constant dense<0.000000e+00> : vector<512xf32>
    %144 = vector.multi_reduction <add>, %141, %cst_59 [0] : vector<8x512xf32> to vector<512xf32>
    %145 = vector.shape_cast %144 : vector<512xf32> to vector<1x512xf32>
    %cst_60 = arith.constant 8.000000e+00 : f32
    %146 = vector.broadcast %cst_60 : f32 to vector<1x512xf32>
    %147 = arith.divf %145, %146 : vector<1x512xf32>
    %148 = vector.broadcast %147 : vector<1x512xf32> to vector<8x512xf32>
    %149 = arith.subf %141, %148 : vector<8x512xf32>
    %150 = arith.mulf %149, %149 : vector<8x512xf32>
    %cst_61 = arith.constant dense<0.000000e+00> : vector<512xf32>
    %151 = vector.multi_reduction <add>, %150, %cst_61 [0] : vector<8x512xf32> to vector<512xf32>
    %152 = vector.shape_cast %151 : vector<512xf32> to vector<1x512xf32>
    %cst_62 = arith.constant 8.000000e+00 : f32
    %153 = vector.broadcast %cst_62 : f32 to vector<1x512xf32>
    %154 = arith.divf %152, %153 : vector<1x512xf32>
    %cst_63 = arith.constant 9.99999974E-6 : f32
    %155 = vector.broadcast %cst_63 : f32 to vector<1x512xf32>
    %156 = arith.addf %154, %155 : vector<1x512xf32>
    %157 = math.rsqrt %156 : vector<1x512xf32>
    %158 = vector.broadcast %157 : vector<1x512xf32> to vector<8x512xf32>
    %159 = arith.mulf %149, %158 : vector<8x512xf32>
    %160 = vector.broadcast %142 : vector<1x512xf32> to vector<8x512xf32>
    %161 = arith.mulf %159, %160 : vector<8x512xf32>
    %162 = vector.broadcast %143 : vector<1x512xf32> to vector<8x512xf32>
    %163 = arith.addf %161, %162 : vector<8x512xf32>
    %cst_64 = arith.constant 0.000000e+00 : f32
    %164 = vector.broadcast %cst_64 : f32 to vector<8x512xf32>
    %165 = arith.cmpf ogt, %163, %164 : vector<8x512xf32>
    %cst_65 = arith.constant 0.00999999977 : f32
    %166 = vector.broadcast %cst_65 : f32 to vector<8x512xf32>
    %167 = arith.mulf %166, %163 : vector<8x512xf32>
    %168 = arith.select %165, %163, %167 : vector<8x512xi1>, vector<8x512xf32>
    %169 = arith.truncf %168 : vector<8x512xf32> to vector<8x512xbf16>
    %c48 = arith.constant 48 : index
    %c0_66 = arith.constant 0 : index
    %170 = vector.load %arg4[%c48, %c0_66] : memref<784x128xbf16, #tpu.memory_space<vmem>>, vector<512x128xbf16>
    %cst_67 = arith.constant dense<0.000000e+00> : vector<8x128xf32>
    %171 = tpu.matmul %169, %170, %cst_67 {dimension_numbers = #tpu.dot_dimension_numbers<[1], [0], [0], [1], [0, 0, 1, 1], [], []>} : vector<8x512xbf16>, vector<512x128xbf16>, vector<8x128xf32> -> vector<8x128xf32>
    %172 = vector.extract_strided_slice %171 {offsets = [0, 0], sizes = [8, 16], strides = [1, 1]} : vector<8x128xf32> to vector<8x16xf32>
    %c0_68 = arith.constant 0 : index
    %c3456 = arith.constant 3456 : index
    %173 = vector.load %arg5[%c0_68, %c3456] : memref<1x6144xf32, #tpu.memory_space<vmem>>, vector<1x16xf32>
    %174 = vector.broadcast %173 : vector<1x16xf32> to vector<8x16xf32>
    %175 = arith.addf %172, %174 : vector<8x16xf32>
    %176 = vector.extract_strided_slice %175 {offsets = [0, 0], sizes = [8, 8], strides = [1, 1]} : vector<8x16xf32> to vector<8x8xf32>
    %177 = vector.extract_strided_slice %175 {offsets = [0, 8], sizes = [8, 8], strides = [1, 1]} : vector<8x16xf32> to vector<8x8xf32>
    %cst_69 = arith.constant 5.000000e-01 : f32
    %178 = vector.broadcast %cst_69 : f32 to vector<8x8xf32>
    %179 = arith.mulf %178, %177 : vector<8x8xf32>
    %180 = math.exp %179 : vector<8x8xf32>
    %181 = arith.mulf %1, %180 : vector<8x8xf32>
    %182 = arith.addf %181, %176 : vector<8x8xf32>
    %183 = arith.truncf %182 : vector<8x8xf32> to vector<8x8xbf16>
    %c256_70 = arith.constant 256 : index
    %c0_71 = arith.constant 0 : index
    %184 = vector.load %arg1[%c256_70, %c0_71] : memref<264x512xbf16, #tpu.memory_space<vmem>>, vector<8x512xbf16>
    %cst_72 = arith.constant dense<0.000000e+00> : vector<8x512xf32>
    %185 = tpu.matmul %183, %184, %cst_72 {dimension_numbers = #tpu.dot_dimension_numbers<[1], [0], [0], [1], [0, 0, 1, 1], [], []>} : vector<8x8xbf16>, vector<8x512xbf16>, vector<8x512xf32> -> vector<8x512xf32>
    %c0_73 = arith.constant 0 : index
    %c3584 = arith.constant 3584 : index
    %186 = vector.load %arg5[%c0_73, %c3584] : memref<1x6144xf32, #tpu.memory_space<vmem>>, vector<1x512xf32>
    %187 = vector.broadcast %186 : vector<1x512xf32> to vector<8x512xf32>
    %188 = arith.addf %185, %187 : vector<8x512xf32>
    %189 = arith.truncf %188 : vector<8x512xf32> to vector<8x512xbf16>
    %c128_74 = arith.constant 128 : index
    %c0_75 = arith.constant 0 : index
    %190 = vector.load %arg2[%c128_74, %c0_75] : memref<640x256xbf16, #tpu.memory_space<vmem>>, vector<512x256xbf16>
    %cst_76 = arith.constant dense<0.000000e+00> : vector<8x256xf32>
    %191 = tpu.matmul %189, %190, %cst_76 {dimension_numbers = #tpu.dot_dimension_numbers<[1], [0], [0], [1], [0, 0, 1, 1], [], []>} : vector<8x512xbf16>, vector<512x256xbf16>, vector<8x256xf32> -> vector<8x256xf32>
    %c0_77 = arith.constant 0 : index
    %c4096 = arith.constant 4096 : index
    %192 = vector.load %arg5[%c0_77, %c4096] : memref<1x6144xf32, #tpu.memory_space<vmem>>, vector<1x256xf32>
    %193 = vector.broadcast %192 : vector<1x256xf32> to vector<8x256xf32>
    %194 = arith.addf %191, %193 : vector<8x256xf32>
    %c0_78 = arith.constant 0 : index
    %c4352 = arith.constant 4352 : index
    %195 = vector.load %arg5[%c0_78, %c4352] : memref<1x6144xf32, #tpu.memory_space<vmem>>, vector<1x256xf32>
    %c0_79 = arith.constant 0 : index
    %c4608 = arith.constant 4608 : index
    %196 = vector.load %arg5[%c0_79, %c4608] : memref<1x6144xf32, #tpu.memory_space<vmem>>, vector<1x256xf32>
    %cst_80 = arith.constant dense<0.000000e+00> : vector<256xf32>
    %197 = vector.multi_reduction <add>, %194, %cst_80 [0] : vector<8x256xf32> to vector<256xf32>
    %198 = vector.shape_cast %197 : vector<256xf32> to vector<1x256xf32>
    %cst_81 = arith.constant 8.000000e+00 : f32
    %199 = vector.broadcast %cst_81 : f32 to vector<1x256xf32>
    %200 = arith.divf %198, %199 : vector<1x256xf32>
    %201 = vector.broadcast %200 : vector<1x256xf32> to vector<8x256xf32>
    %202 = arith.subf %194, %201 : vector<8x256xf32>
    %203 = arith.mulf %202, %202 : vector<8x256xf32>
    %cst_82 = arith.constant dense<0.000000e+00> : vector<256xf32>
    %204 = vector.multi_reduction <add>, %203, %cst_82 [0] : vector<8x256xf32> to vector<256xf32>
    %205 = vector.shape_cast %204 : vector<256xf32> to vector<1x256xf32>
    %cst_83 = arith.constant 8.000000e+00 : f32
    %206 = vector.broadcast %cst_83 : f32 to vector<1x256xf32>
    %207 = arith.divf %205, %206 : vector<1x256xf32>
    %cst_84 = arith.constant 9.99999974E-6 : f32
    %208 = vector.broadcast %cst_84 : f32 to vector<1x256xf32>
    %209 = arith.addf %207, %208 : vector<1x256xf32>
    %210 = math.rsqrt %209 : vector<1x256xf32>
    %211 = vector.broadcast %210 : vector<1x256xf32> to vector<8x256xf32>
    %212 = arith.mulf %202, %211 : vector<8x256xf32>
    %213 = vector.broadcast %195 : vector<1x256xf32> to vector<8x256xf32>
    %214 = arith.mulf %212, %213 : vector<8x256xf32>
    %215 = vector.broadcast %196 : vector<1x256xf32> to vector<8x256xf32>
    %216 = arith.addf %214, %215 : vector<8x256xf32>
    %cst_85 = arith.constant 0.000000e+00 : f32
    %217 = vector.broadcast %cst_85 : f32 to vector<8x256xf32>
    %218 = arith.cmpf ogt, %216, %217 : vector<8x256xf32>
    %cst_86 = arith.constant 0.00999999977 : f32
    %219 = vector.broadcast %cst_86 : f32 to vector<8x256xf32>
    %220 = arith.mulf %219, %216 : vector<8x256xf32>
    %221 = arith.select %218, %216, %220 : vector<8x256xi1>, vector<8x256xf32>
    %222 = arith.truncf %221 : vector<8x256xf32> to vector<8x256xbf16>
    %c64_87 = arith.constant 64 : index
    %c0_88 = arith.constant 0 : index
    %223 = vector.load %arg3[%c64_87, %c0_88] : memref<320x128xbf16, #tpu.memory_space<vmem>>, vector<256x128xbf16>
    %cst_89 = arith.constant dense<0.000000e+00> : vector<8x128xf32>
    %224 = tpu.matmul %222, %223, %cst_89 {dimension_numbers = #tpu.dot_dimension_numbers<[1], [0], [0], [1], [0, 0, 1, 1], [], []>} : vector<8x256xbf16>, vector<256x128xbf16>, vector<8x128xf32> -> vector<8x128xf32>
    %c0_90 = arith.constant 0 : index
    %c4864 = arith.constant 4864 : index
    %225 = vector.load %arg5[%c0_90, %c4864] : memref<1x6144xf32, #tpu.memory_space<vmem>>, vector<1x128xf32>
    %226 = vector.broadcast %225 : vector<1x128xf32> to vector<8x128xf32>
    %227 = arith.addf %224, %226 : vector<8x128xf32>
    %c0_91 = arith.constant 0 : index
    %c4992 = arith.constant 4992 : index
    %228 = vector.load %arg5[%c0_91, %c4992] : memref<1x6144xf32, #tpu.memory_space<vmem>>, vector<1x128xf32>
    %c0_92 = arith.constant 0 : index
    %c5120 = arith.constant 5120 : index
    %229 = vector.load %arg5[%c0_92, %c5120] : memref<1x6144xf32, #tpu.memory_space<vmem>>, vector<1x128xf32>
    %cst_93 = arith.constant dense<0.000000e+00> : vector<128xf32>
    %230 = vector.multi_reduction <add>, %227, %cst_93 [0] : vector<8x128xf32> to vector<128xf32>
    %231 = vector.shape_cast %230 : vector<128xf32> to vector<1x128xf32>
    %cst_94 = arith.constant 8.000000e+00 : f32
    %232 = vector.broadcast %cst_94 : f32 to vector<1x128xf32>
    %233 = arith.divf %231, %232 : vector<1x128xf32>
    %234 = vector.broadcast %233 : vector<1x128xf32> to vector<8x128xf32>
    %235 = arith.subf %227, %234 : vector<8x128xf32>
    %236 = arith.mulf %235, %235 : vector<8x128xf32>
    %cst_95 = arith.constant dense<0.000000e+00> : vector<128xf32>
    %237 = vector.multi_reduction <add>, %236, %cst_95 [0] : vector<8x128xf32> to vector<128xf32>
    %238 = vector.shape_cast %237 : vector<128xf32> to vector<1x128xf32>
    %cst_96 = arith.constant 8.000000e+00 : f32
    %239 = vector.broadcast %cst_96 : f32 to vector<1x128xf32>
    %240 = arith.divf %238, %239 : vector<1x128xf32>
    %cst_97 = arith.constant 9.99999974E-6 : f32
    %241 = vector.broadcast %cst_97 : f32 to vector<1x128xf32>
    %242 = arith.addf %240, %241 : vector<1x128xf32>
    %243 = math.rsqrt %242 : vector<1x128xf32>
    %244 = vector.broadcast %243 : vector<1x128xf32> to vector<8x128xf32>
    %245 = arith.mulf %235, %244 : vector<8x128xf32>
    %246 = vector.broadcast %228 : vector<1x128xf32> to vector<8x128xf32>
    %247 = arith.mulf %245, %246 : vector<8x128xf32>
    %248 = vector.broadcast %229 : vector<1x128xf32> to vector<8x128xf32>
    %249 = arith.addf %247, %248 : vector<8x128xf32>
    %cst_98 = arith.constant 0.000000e+00 : f32
    %250 = vector.broadcast %cst_98 : f32 to vector<8x128xf32>
    %251 = arith.cmpf ogt, %249, %250 : vector<8x128xf32>
    %cst_99 = arith.constant 0.00999999977 : f32
    %252 = vector.broadcast %cst_99 : f32 to vector<8x128xf32>
    %253 = arith.mulf %252, %249 : vector<8x128xf32>
    %254 = arith.select %251, %249, %253 : vector<8x128xi1>, vector<8x128xf32>
    %255 = arith.truncf %254 : vector<8x128xf32> to vector<8x128xbf16>
    %c560 = arith.constant 560 : index
    %c0_100 = arith.constant 0 : index
    %256 = vector.load %arg4[%c560, %c0_100] : memref<784x128xbf16, #tpu.memory_space<vmem>>, vector<128x128xbf16>
    %cst_101 = arith.constant dense<0.000000e+00> : vector<8x128xf32>
    %257 = tpu.matmul %255, %256, %cst_101 {dimension_numbers = #tpu.dot_dimension_numbers<[1], [0], [0], [1], [0, 0, 1, 1], [], []>} : vector<8x128xbf16>, vector<128x128xbf16>, vector<8x128xf32> -> vector<8x128xf32>
    %258 = vector.extract_strided_slice %257 {offsets = [0, 0], sizes = [8, 64], strides = [1, 1]} : vector<8x128xf32> to vector<8x64xf32>
    %c0_102 = arith.constant 0 : index
    %c5248 = arith.constant 5248 : index
    %259 = vector.load %arg5[%c0_102, %c5248] : memref<1x6144xf32, #tpu.memory_space<vmem>>, vector<1x64xf32>
    %260 = vector.broadcast %259 : vector<1x64xf32> to vector<8x64xf32>
    %261 = arith.addf %258, %260 : vector<8x64xf32>
    %c0_103 = arith.constant 0 : index
    %c5376 = arith.constant 5376 : index
    %262 = vector.load %arg5[%c0_103, %c5376] : memref<1x6144xf32, #tpu.memory_space<vmem>>, vector<1x64xf32>
    %c0_104 = arith.constant 0 : index
    %c5504 = arith.constant 5504 : index
    %263 = vector.load %arg5[%c0_104, %c5504] : memref<1x6144xf32, #tpu.memory_space<vmem>>, vector<1x64xf32>
    %cst_105 = arith.constant dense<0.000000e+00> : vector<64xf32>
    %264 = vector.multi_reduction <add>, %261, %cst_105 [0] : vector<8x64xf32> to vector<64xf32>
    %265 = vector.shape_cast %264 : vector<64xf32> to vector<1x64xf32>
    %cst_106 = arith.constant 8.000000e+00 : f32
    %266 = vector.broadcast %cst_106 : f32 to vector<1x64xf32>
    %267 = arith.divf %265, %266 : vector<1x64xf32>
    %268 = vector.broadcast %267 : vector<1x64xf32> to vector<8x64xf32>
    %269 = arith.subf %261, %268 : vector<8x64xf32>
    %270 = arith.mulf %269, %269 : vector<8x64xf32>
    %cst_107 = arith.constant dense<0.000000e+00> : vector<64xf32>
    %271 = vector.multi_reduction <add>, %270, %cst_107 [0] : vector<8x64xf32> to vector<64xf32>
    %272 = vector.shape_cast %271 : vector<64xf32> to vector<1x64xf32>
    %cst_108 = arith.constant 8.000000e+00 : f32
    %273 = vector.broadcast %cst_108 : f32 to vector<1x64xf32>
    %274 = arith.divf %272, %273 : vector<1x64xf32>
    %cst_109 = arith.constant 9.99999974E-6 : f32
    %275 = vector.broadcast %cst_109 : f32 to vector<1x64xf32>
    %276 = arith.addf %274, %275 : vector<1x64xf32>
    %277 = math.rsqrt %276 : vector<1x64xf32>
    %278 = vector.broadcast %277 : vector<1x64xf32> to vector<8x64xf32>
    %279 = arith.mulf %269, %278 : vector<8x64xf32>
    %280 = vector.broadcast %262 : vector<1x64xf32> to vector<8x64xf32>
    %281 = arith.mulf %279, %280 : vector<8x64xf32>
    %282 = vector.broadcast %263 : vector<1x64xf32> to vector<8x64xf32>
    %283 = arith.addf %281, %282 : vector<8x64xf32>
    %cst_110 = arith.constant 0.000000e+00 : f32
    %284 = vector.broadcast %cst_110 : f32 to vector<8x64xf32>
    %285 = arith.cmpf ogt, %283, %284 : vector<8x64xf32>
    %cst_111 = arith.constant 0.00999999977 : f32
    %286 = vector.broadcast %cst_111 : f32 to vector<8x64xf32>
    %287 = arith.mulf %286, %283 : vector<8x64xf32>
    %288 = arith.select %285, %283, %287 : vector<8x64xi1>, vector<8x64xf32>
    %289 = arith.truncf %288 : vector<8x64xf32> to vector<8x64xbf16>
    %c688 = arith.constant 688 : index
    %c0_112 = arith.constant 0 : index
    %290 = vector.load %arg4[%c688, %c0_112] : memref<784x128xbf16, #tpu.memory_space<vmem>>, vector<64x128xbf16>
    %cst_113 = arith.constant dense<0.000000e+00> : vector<8x128xf32>
    %291 = tpu.matmul %289, %290, %cst_113 {dimension_numbers = #tpu.dot_dimension_numbers<[1], [0], [0], [1], [0, 0, 1, 1], [], []>} : vector<8x64xbf16>, vector<64x128xbf16>, vector<8x128xf32> -> vector<8x128xf32>
    %292 = vector.extract_strided_slice %291 {offsets = [0, 0], sizes = [8, 32], strides = [1, 1]} : vector<8x128xf32> to vector<8x32xf32>
    %c0_114 = arith.constant 0 : index
    %c5632 = arith.constant 5632 : index
    %293 = vector.load %arg5[%c0_114, %c5632] : memref<1x6144xf32, #tpu.memory_space<vmem>>, vector<1x32xf32>
    %294 = vector.broadcast %293 : vector<1x32xf32> to vector<8x32xf32>
    %295 = arith.addf %292, %294 : vector<8x32xf32>
    %c0_115 = arith.constant 0 : index
    %c5760 = arith.constant 5760 : index
    %296 = vector.load %arg5[%c0_115, %c5760] : memref<1x6144xf32, #tpu.memory_space<vmem>>, vector<1x32xf32>
    %c0_116 = arith.constant 0 : index
    %c5888 = arith.constant 5888 : index
    %297 = vector.load %arg5[%c0_116, %c5888] : memref<1x6144xf32, #tpu.memory_space<vmem>>, vector<1x32xf32>
    %cst_117 = arith.constant dense<0.000000e+00> : vector<32xf32>
    %298 = vector.multi_reduction <add>, %295, %cst_117 [0] : vector<8x32xf32> to vector<32xf32>
    %299 = vector.shape_cast %298 : vector<32xf32> to vector<1x32xf32>
    %cst_118 = arith.constant 8.000000e+00 : f32
    %300 = vector.broadcast %cst_118 : f32 to vector<1x32xf32>
    %301 = arith.divf %299, %300 : vector<1x32xf32>
    %302 = vector.broadcast %301 : vector<1x32xf32> to vector<8x32xf32>
    %303 = arith.subf %295, %302 : vector<8x32xf32>
    %304 = arith.mulf %303, %303 : vector<8x32xf32>
    %cst_119 = arith.constant dense<0.000000e+00> : vector<32xf32>
    %305 = vector.multi_reduction <add>, %304, %cst_119 [0] : vector<8x32xf32> to vector<32xf32>
    %306 = vector.shape_cast %305 : vector<32xf32> to vector<1x32xf32>
    %cst_120 = arith.constant 8.000000e+00 : f32
    %307 = vector.broadcast %cst_120 : f32 to vector<1x32xf32>
    %308 = arith.divf %306, %307 : vector<1x32xf32>
    %cst_121 = arith.constant 9.99999974E-6 : f32
    %309 = vector.broadcast %cst_121 : f32 to vector<1x32xf32>
    %310 = arith.addf %308, %309 : vector<1x32xf32>
    %311 = math.rsqrt %310 : vector<1x32xf32>
    %312 = vector.broadcast %311 : vector<1x32xf32> to vector<8x32xf32>
    %313 = arith.mulf %303, %312 : vector<8x32xf32>
    %314 = vector.broadcast %296 : vector<1x32xf32> to vector<8x32xf32>
    %315 = arith.mulf %313, %314 : vector<8x32xf32>
    %316 = vector.broadcast %297 : vector<1x32xf32> to vector<8x32xf32>
    %317 = arith.addf %315, %316 : vector<8x32xf32>
    %cst_122 = arith.constant 0.000000e+00 : f32
    %318 = vector.broadcast %cst_122 : f32 to vector<8x32xf32>
    %319 = arith.cmpf ogt, %317, %318 : vector<8x32xf32>
    %cst_123 = arith.constant 0.00999999977 : f32
    %320 = vector.broadcast %cst_123 : f32 to vector<8x32xf32>
    %321 = arith.mulf %320, %317 : vector<8x32xf32>
    %322 = arith.select %319, %317, %321 : vector<8x32xi1>, vector<8x32xf32>
    %323 = arith.truncf %322 : vector<8x32xf32> to vector<8x32xbf16>
    %c752 = arith.constant 752 : index
    %c0_124 = arith.constant 0 : index
    %324 = vector.load %arg4[%c752, %c0_124] : memref<784x128xbf16, #tpu.memory_space<vmem>>, vector<32x128xbf16>
    %cst_125 = arith.constant dense<0.000000e+00> : vector<8x128xf32>
    %325 = tpu.matmul %323, %324, %cst_125 {dimension_numbers = #tpu.dot_dimension_numbers<[1], [0], [0], [1], [0, 0, 1, 1], [], []>} : vector<8x32xbf16>, vector<32x128xbf16>, vector<8x128xf32> -> vector<8x128xf32>
    %326 = vector.extract_strided_slice %325 {offsets = [0, 0], sizes = [8, 16], strides = [1, 1]} : vector<8x128xf32> to vector<8x16xf32>
    %c0_126 = arith.constant 0 : index
    %c6016 = arith.constant 6016 : index
    %327 = vector.load %arg5[%c0_126, %c6016] : memref<1x6144xf32, #tpu.memory_space<vmem>>, vector<1x16xf32>
    %328 = vector.broadcast %327 : vector<1x16xf32> to vector<8x16xf32>
    %329 = arith.addf %326, %328 : vector<8x16xf32>
    %330 = arith.negf %329 : vector<8x16xf32>
    %331 = math.exp %330 : vector<8x16xf32>
    %cst_127 = arith.constant 1.000000e+00 : f32
    %332 = vector.broadcast %cst_127 : f32 to vector<8x16xf32>
    %333 = arith.addf %332, %331 : vector<8x16xf32>
    %334 = arith.divf %332, %333 : vector<8x16xf32>
    %cst_128 = arith.constant 0.000000e+00 : f32
    %335 = vector.broadcast %cst_128 : f32 to vector<8x128xf32>
    %c0_129 = arith.constant 0 : index
    %c0_130 = arith.constant 0 : index
    %336 = vector.load %arg6[%c0_129, %c0_130] : memref<8x128xf32, #tpu.memory_space<vmem>>, vector<8x128xf32>
    tpu.vector_store %arg6[%c0_129, %c0_130], %335 {strides = array<i32>} : memref<8x128xf32, #tpu.memory_space<vmem>>, vector<8x128xf32>,
    %c0_131 = arith.constant 0 : index
    %c0_132 = arith.constant 0 : index
    %337 = vector.load %arg6[%c0_131, %c0_132] : memref<8x128xf32, #tpu.memory_space<vmem>>, vector<8x16xf32>
    tpu.vector_store %arg6[%c0_131, %c0_132], %334 {strides = array<i32>} : memref<8x128xf32, #tpu.memory_space<vmem>>, vector<8x16xf32>,
    %c0_133 = arith.constant 0 : index
    %c16_134 = arith.constant 16 : index
    %338 = vector.load %arg6[%c0_133, %c16_134] : memref<8x128xf32, #tpu.memory_space<vmem>>, vector<8x16xf32>
    tpu.vector_store %arg6[%c0_133, %c16_134], %175 {strides = array<i32>} : memref<8x128xf32, #tpu.memory_space<vmem>>, vector<8x16xf32>,
    return
  }
}

</mosaic_0001>

<bundles_post_ra>
// kernel: vae_pi_forward.1
= control target key start
LH: loop header
LB: loop body
LE: loop exit
PB: predicated region body
PF: predicated region fallthrough
CT: control target
= control target key end

     0   :  { %11 = vsyncpa [#allocation3], 0  ;;  %s4010_s0 = inlined_call_operand.vmem [shape: f32[8,128], index: 0, kind: input, shape index: {}]   ;;  %s4011_s1 = inlined_call_operand.hbm [shape: bf16[264,512], index: 1, kind: input, shape index: {}]   ;;  %s4012_s2 = inlined_call_operand.hbm [shape: bf16[640,256], index: 2, kind: input, shape index: {}]   ;;  %s4013_s3 = inlined_call_operand.hbm [shape: bf16[320,128], index: 3, kind: input, shape index: {}]   ;;  %s4014_s4 = inlined_call_operand.hbm [shape: bf16[784,128], index: 4, kind: input, shape index: {}]   ;;  %s4015_s5 = inlined_call_operand.vmem [shape: f32[1,6144], index: 5, kind: input, shape index: {}]   ;;  %s4016_s6 = inlined_call_operand.vmem [shape: f32[8,128], index: 6, kind: output, shape index: {}]  }
   0x1   :  { %12 = vsyncpa [#allocation5], 0 }
   0x2   :  { %13 = vsyncpa [#allocation8], 0  ;;  %s3728_s21 = smov [#allocation4]  }
   0x3   :  { %s33_s22 = sshll.u32 %s3728_s21, 4  ;;  %s34_s22 = int_to_ptr.vmem [resolvable:$true] %s33_s22 }
   0x4   :  { %s3650_s23 = scalar_lea.vmem %s34_s22, 10240  ;;  %p3655_p1 = scmp.lt.s32.totalorder %s34_s22, %s34_s22 }
   0x5   :  { %p3651_p0 = scmp.ne.s32.totalorder %s34_s22, %s3650_s23  ;;  %p3656_p2 = scmp.lt.s32.totalorder %s3650_s23, %s3650_s23 }
   0x7   :  { %p3657_p3 = por %p3656_p2, %p3655_p1 }
   0x9   :  { %p3658_p4 = pnand %p3657_p3, %p3651_p0 }
   0xb   :  { %3661 = shalt.err (!%p3658_p4)
}
   0xc   :  { %s3729_s24 = smov 128   ;;  %s3730_s25 = smov 8  }
   0xd   :  { %39 = dma.hbm_to_vmem [thread:$0]  %s4012_s2, 10240, %s34_s22, [#allocation5], %s3729_s24, %s3729_s24, %s3730_s25  }
   0xe   :  { %s3731_s28 = smov [#allocation2]  }
   0xf   :  { %s21_s29 = sshll.u32 %s3731_s28, 4  ;;  %s22_s29 = int_to_ptr.vmem [resolvable:$true] %s21_s29 }
  0x10   :  { %s3670_s30 = scalar_lea.vmem %s22_s29, 8448  ;;  %p3675_p6 = scmp.lt.s32.totalorder %s22_s29, %s22_s29 }
  0x11   :  { %p3671_p5 = scmp.ne.s32.totalorder %s22_s29, %s3670_s30  ;;  %p3676_p7 = scmp.lt.s32.totalorder %s3670_s30, %s3670_s30 }
  0x13   :  { %p3677_p8 = por %p3676_p7, %p3675_p6 }
  0x15   :  { %p3678_p9 = pnand %p3677_p8, %p3671_p5 }
  0x17   :  { %3681 = shalt.err (!%p3678_p9)
}
  0x18   :  { %s3732_s7 = smov 256   ;;  %s3733_s8 = smov 16  }
  0x19   :  { %27 = dma.hbm_to_vmem [thread:$0]  %s4011_s1, 8448, %s22_s29, [#allocation3], %s3732_s7, %s3732_s7, %s3733_s8  }
  0x1a   :  { %s3734_s11 = smov [#allocation6]  }
  0x1b   :  { %s45_s12 = sshll.u32 %s3734_s11, 4  ;;  %s46_s12 = int_to_ptr.vmem [resolvable:$true] %s45_s12 }
  0x1c   :  { %s3690_s2 = scalar_lea.vmem %s46_s12, 2560  ;;  %p3695_p11 = scmp.lt.s32.totalorder %s46_s12, %s46_s12 }
  0x1d   :  { %p3691_p10 = scmp.ne.s32.totalorder %s46_s12, %s3690_s2  ;;  %p3696_p12 = scmp.lt.s32.totalorder %s3690_s2, %s3690_s2 }
  0x1f   :  { %p3697_p13 = por %p3696_p12, %p3695_p11 }
  0x21   :  { %p3698_p0 = pnand %p3697_p13, %p3691_p10 }
  0x23   :  { %3701 = shalt.err (!%p3698_p0)
}
  0x24   :  { %s3735_s13 = smov 64   ;;  %s3736_s14 = smov 4  }
  0x25   :  { %51 = dma.hbm_to_vmem [thread:$0]  %s4013_s3, 2560, %s46_s12, [#allocation5], %s3735_s13, %s3735_s13, %s3736_s14  }
  0x26   :  { %s3737_s17 = smov [#allocation7]  }
  0x27   :  { %s57_s1 = sshll.u32 %s3737_s17, 4  ;;  %s58_s1 = int_to_ptr.vmem [resolvable:$true] %s57_s1 }
  0x28   :  { %s3710_s18 = scalar_lea.vmem %s58_s1, 6272  ;;  %p3715_p2 = scmp.lt.s32.totalorder %s58_s1, %s58_s1 }
  0x29   :  { %p3711_p1 = scmp.ne.s32.totalorder %s58_s1, %s3710_s18  ;;  %p3716_p3 = scmp.lt.s32.totalorder %s3710_s18, %s3710_s18 }
  0x2b   :  { %p3717_p4 = por %p3716_p3, %p3715_p2 }
  0x2d   :  { %p3718_p5 = pnand %p3717_p4, %p3711_p1 }
  0x2f   :  { %3721 = shalt.err (!%p3718_p5)
}
  0x30   :  { %63 = dma.hbm_to_vmem [thread:$0]  %s4014_s4, 6272, %s58_s1, [#allocation8], %s3735_s13, %s3735_s13, %s3736_s14  }
  0x31   :  { %3722 = dma.done.wait [#allocation3], 8448  }
  0x32   :  { %3723 = vsyncadd [#allocation3], 4294958848 }
  0x33   :  { %3724 = dma.done.wait [#allocation5], 12800  }
  0x34   :  { %3725 = vsyncadd [#allocation5], 4294954496 }
  0x35   :  { %3726 = dma.done.wait [#allocation8], 6272  }
  0x36   :  { %3727 = vsyncadd [#allocation8], 4294961024  ;;  %v3738_v0 = vmov 0.0   ;;  %vm3739_vm0 = vmmov 0   ;;  %v3317_v1 = vld [vmem:[#allocation7] sm:$0xff]   ;;  %v79_v2 = vld [vmem:[%s4010_s0] sm:$0xff] }
  0x37   :  { %3237 = vmatprep.subr.bf16.mxu0 %v3738_v0  ;;  %2883 = vst [vmem:[%s4016_s6] sm:$0xff] %v3738_v0  ;;  %3239 = vmatprep.mubr.msk.bf16.mxu0 %vm3739_vm0, %v3738_v0  ;;  %vm89_vm1 = vcmask 130048   ;;  %v80_v3 = vpack.c.bf16 %v79_v2, %v79_v2  ;;  %v3318_v4 = vld [vmem:[#allocation7 + $0x10] sm:$0xff]   ;;  %v3319_v5 = vld [vmem:[#allocation7 + $0x8] sm:$0xff]   ;;  %vm143_vm2 = vcmask 261120   ;;  %v3320_v40 = vld [vmem:[#allocation6 + $0x18] sm:$0xff]   ;;  %vm253_vm4 = vcmask 523264  }
  0x38   :  { %3243 = vmatprep.subr.bf16.mxu1 %v3738_v0  ;;  %3247 = vmatprep.mubr.msk.bf16.mxu1 %vm3739_vm0, %v3738_v0  ;;  %v2899_v6 = vld [vmem:[%s4015_s5] ss:$0 sm:$0xff]  ;;  %v2900_v32 = vld [vmem:[%s4015_s5 + $0x1] ss:$0 sm:$0xff]  ;;  %v2901_v34 = vld [vmem:[%s4015_s5 + $0x2] ss:$0 sm:$0xff] }
  0x39   :  { %3238 = vmatpush3.bf16.msra.mxu0 %v3317_v1  ;;  %3244 = vmatpush3.bf16.msra.mxu1 %v3318_v4  ;;  %v3321_v41 = vld [vmem:[#allocation6 + $0x10] sm:$0xff]   ;;  %v3322_v42 = vld [vmem:[#allocation6 + $0x8] sm:$0xff]   ;;  %v3323_v43 = vld [vmem:[#allocation6] sm:$0xff]   ;;  %vm1668_vm13 = vcmask 1043456   ;;  %s3741_s29 = smov 56   ;;  %vm1664_vm14 = vcmask 64512  }
  0x3a   :  { %3251 = vmatprep.subr.bf16.mxu0 %v3738_v0  ;;  %3245 = vmatprep.subr.bf16.mxu1 %v3738_v0  ;;  %v2905_v44 = vld [vmem:[%s4015_s5 + $0x3] ss:$0 sm:$0xff] }
  0x3c   :  { %3240 = vmatmul.mubr.msk.bf16.vlgmr.msra.gmra.mxu0 %vm89_vm1, %v80_v3 }
  0x3d   :  { %3259 = vmatprep.mubr.msk.bf16.mxu0 %vm3739_vm0, %v3738_v0  ;;  %3246 = vmatpush3.bf16.msra.mxu1 %v3319_v5 }
  0x3e   :  { %3252 = vmatpush3.bf16.msra.mxu0 %v3320_v40 }
  0x3f   :  { %3253 = vmatprep.subr.bf16.mxu0 %v3738_v0 }
  0x42   :  { %3254 = vmatpush3.bf16.msra.mxu0 %v3321_v41 }
  0x43   :  { %3255 = vmatprep.subr.bf16.mxu0 %v3738_v0 }
  0x46   :  { %3256 = vmatpush3.bf16.msra.mxu0 %v3322_v42 }
  0x47   :  { %3257 = vmatprep.subr.bf16.mxu0 %v3738_v0 }
  0x4a   :  { %3258 = vmatpush3.bf16.msra.mxu0 %v3323_v43 }
  0xfc   :  { %v127_v7 = vpop.f32.mrf.mxu0 }
  0xfd   :  { %v140_v8 = vadd.f32 %v2899_v6, %v127_v7  ;;  %v2906_v6 = vld [vmem:[%s4015_s5 + $0x4] ss:$0 sm:$0xff] }
  0xfe   :  { %v3241_v9 = vpop.f32.mrf.mxu0 }
  0xff   :  { %v144_v10 = vsel %vm143_vm2, %v140_v8, 0.0 }
 0x100   :  { %v145_v11 = vrot.slane %v144_v10, 4  ;;  %v130_v12 = vpop.f32.mrf.mxu0 }
 0x102   :  { %v146_v13 = vadd.f32 %v145_v11, %v144_v10  ;;  %v3242_v14 = vpop.f32.mrf.mxu0 }
 0x103   :  { %v3326_v14 = vld [vmem:[#allocation4 + $0x74] ss:$8 sps:$4 sm:$0xff]  }
 0x104   :  { %v147_v15 = vrot.slane %v146_v13, 2  ;;  %522 = vmatprep.subr.bf16.mxu1 %v3326_v14  ;;  %v3369_v14 = vld [vmem:[#allocation2 + $0x88] ss:$16 sps:$4 sm:$0xff]  }
 0x106   :  { %v148_v16 = vadd.f32 %v147_v15, %v146_v13  ;;  %v3324_v15 = vld [vmem:[#allocation4 + $0x70] ss:$8 sps:$4 sm:$0xff]  }
 0x108   :  { %v149_v17 = vrot.slane %v148_v16, 1 }
 0x10a   :  { %v150_v18 = vadd.f32 %v149_v17, %v148_v16  ;;  %v3329_v16 = vld [vmem:[#allocation4 + $0x64] ss:$8 sps:$4 sm:$0xff]   ;;  %v3327_v17 = vld [vmem:[#allocation4 + $0x60] ss:$8 sps:$4 sm:$0xff]  }
 0x10c   :  { %v152_v19 = vmul.f32 0.125, %v150_v18  ;;  %v3332_v18 = vld [vmem:[#allocation4 + $0x54] ss:$8 sps:$4 sm:$0xff]  }
 0x10e   :  { %v153_v20 = vsub.f32 %v140_v8, %v152_v19  ;;  %v2907_v8 = vld [vmem:[%s4015_s5 + $0x5] ss:$0 sm:$0xff]  ;;  %v3330_v19 = vld [vmem:[#allocation4 + $0x50] ss:$8 sps:$4 sm:$0xff]  }
 0x110   :  { %v154_v21 = vmul.f32 %v153_v20, %v153_v20 }
 0x112   :  { %v155_v22 = vsel %vm143_vm2, %v154_v21, 0.0  ;;  %v3333_v21 = vld [vmem:[#allocation4 + $0x40] ss:$8 sps:$4 sm:$0xff]  }
 0x113   :  { %v156_v23 = vrot.slane %v155_v22, 4 }
 0x115   :  { %v157_v24 = vadd.f32 %v156_v23, %v155_v22  ;;  %v3338_v22 = vld [vmem:[#allocation4 + $0x34] ss:$8 sps:$4 sm:$0xff]   ;;  %v3336_v23 = vld [vmem:[#allocation4 + $0x30] ss:$8 sps:$4 sm:$0xff]  }
 0x117   :  { %v158_v25 = vrot.slane %v157_v24, 2 }
 0x119   :  { %v159_v26 = vadd.f32 %v158_v25, %v157_v24  ;;  %v3341_v24 = vld [vmem:[#allocation4 + $0x24] ss:$8 sps:$4 sm:$0xff]   ;;  %v3339_v25 = vld [vmem:[#allocation4 + $0x20] ss:$8 sps:$4 sm:$0xff]  }
 0x11b   :  { %v160_v27 = vrot.slane %v159_v26, 1 }
 0x11d   :  { %v161_v28 = vadd.f32 %v160_v27, %v159_v26  ;;  %v3344_v26 = vld [vmem:[#allocation4 + $0x14] ss:$8 sps:$4 sm:$0xff]   ;;  %v3342_v27 = vld [vmem:[#allocation4 + $0x10] ss:$8 sps:$4 sm:$0xff]  }
 0x11f   :  { %v162_v29 = vmul.f32 0.125, %v161_v28  ;;  %v3345_v28 = vld [vmem:[#allocation4] ss:$8 sps:$4 sm:$0xff]  }
 0x121   :  { %v163_v30 = vadd.f32 1e-05, %v162_v29  ;;  %v3347_v29 = vld [vmem:[#allocation4 + $0x4] ss:$8 sps:$4 sm:$0xff]  }
 0x123   :  { %3606 = vrsqrt.f32 %v163_v30  ;;  %v3740_v30 = vmov 0  }
 0x130   :  { %v3607_v31 = vpop.eup %3606 }
 0x131   :  { %v165_v33 = vmul.f32 %v3607_v31, %v153_v20  ;;  %v3335_v20 = vld [vmem:[#allocation4 + $0x44] ss:$8 sps:$4 sm:$0xff]   ;;  %v2908_v31 = vld [vmem:[%s4015_s5 + $0x6] ss:$0 sm:$0xff] }
 0x133   :  { %v172_v35 = vmul.f32 %v2900_v32, %v165_v33 }
 0x135   :  { %v179_v36 = vadd.f32 %v2901_v34, %v172_v35 }
 0x137   :  { %vm180_vm3 = vcmp.gt.f32.partialorder %v179_v36, 0.0  ;;  %v181_v37 = vmul.f32 0.01, %v179_v36 }
 0x139   :  { %v182_v38 = vsel %vm180_vm3, %v179_v36, %v181_v37 }
 0x13a   :  { %v183_v39 = vpack.c.bf16 %v182_v38, %v182_v38 }
 0x13c   :  { %3248 = vmatmul.mubr.msk.bf16.vlgmr.msra.gmra.mxu1 %vm143_vm2, %v183_v39 }
 0x13d   :  { %523 = vmatpush1.bf16.msra.mxu1 %v3324_v15  ;;  %554 = vmatprep.mubr.bf16.mxu1 %v3740_v30  ;;  %v3374_v15 = vld [vmem:[#allocation2 + $0x64] ss:$16 sps:$4 sm:$0xff]  }
 0x13e   :  { %524 = vmatprep.subr.bf16.mxu1 %v3329_v16  ;;  %v3377_v16 = vld [vmem:[#allocation2 + $0x6c] ss:$16 sps:$4 sm:$0xff]  }
 0x141   :  { %525 = vmatpush1.bf16.msra.mxu1 %v3327_v17  ;;  %v3372_v17 = vld [vmem:[#allocation2 + $0x60] ss:$16 sps:$4 sm:$0xff]  }
 0x142   :  { %526 = vmatprep.subr.bf16.mxu1 %v3332_v18  ;;  %v3375_v18 = vld [vmem:[#allocation2 + $0x68] ss:$16 sps:$4 sm:$0xff]  }
 0x145   :  { %527 = vmatpush1.bf16.msra.mxu1 %v3330_v19  ;;  %v3380_v19 = vld [vmem:[#allocation2 + $0x44] ss:$16 sps:$4 sm:$0xff]  }
 0x146   :  { %528 = vmatprep.subr.bf16.mxu1 %v3335_v20  ;;  %v3383_v20 = vld [vmem:[#allocation2 + $0x4c] ss:$16 sps:$4 sm:$0xff]  }
 0x149   :  { %529 = vmatpush1.bf16.msra.mxu1 %v3333_v21  ;;  %v3378_v21 = vld [vmem:[#allocation2 + $0x40] ss:$16 sps:$4 sm:$0xff]  }
 0x14a   :  { %530 = vmatprep.subr.bf16.mxu1 %v3338_v22  ;;  %v3381_v22 = vld [vmem:[#allocation2 + $0x48] ss:$16 sps:$4 sm:$0xff]  }
 0x14d   :  { %531 = vmatpush1.bf16.msra.mxu1 %v3336_v23  ;;  %v3386_v23 = vld [vmem:[#allocation2 + $0x24] ss:$16 sps:$4 sm:$0xff]  }
 0x14e   :  { %532 = vmatprep.subr.bf16.mxu1 %v3341_v24  ;;  %v3389_v24 = vld [vmem:[#allocation2 + $0x2c] ss:$16 sps:$4 sm:$0xff]  }
 0x151   :  { %533 = vmatpush1.bf16.msra.mxu1 %v3339_v25  ;;  %v3384_v25 = vld [vmem:[#allocation2 + $0x20] ss:$16 sps:$4 sm:$0xff]  }
 0x152   :  { %534 = vmatprep.subr.bf16.mxu1 %v3344_v26  ;;  %v3387_v26 = vld [vmem:[#allocation2 + $0x28] ss:$16 sps:$4 sm:$0xff]  }
 0x155   :  { %535 = vmatpush1.bf16.msra.mxu1 %v3342_v27  ;;  %v3392_v27 = vld [vmem:[#allocation2 + $0x4] ss:$16 sps:$4 sm:$0xff]  }
 0x156   :  { %536 = vmatprep.subr.bf16.mxu1 %v3347_v29  ;;  %v3390_v29 = vld [vmem:[#allocation2] ss:$16 sps:$4 sm:$0xff]  }
 0x159   :  { %537 = vmatpush1.bf16.msra.mxu1 %v3345_v28  ;;  %v3395_v28 = vld [vmem:[#allocation2 + $0xc] ss:$16 sps:$4 sm:$0xff]  }
 0x1fc   :  { %v237_v45 = vpop.f32.mrf.mxu1 }
 0x1fd   :  { %v250_v46 = vadd.f32 %v2905_v44, %v237_v45 }
 0x1fe   :  { %v3249_v47 = vpop.f32.mrf.mxu1 }
 0x1ff   :  { %v254_v48 = vsel %vm253_vm4, %v250_v46, 0.0 }
 0x200   :  { %v255_v49 = vrot.slane %v254_v48, 4  ;;  %v240_v50 = vpop.f32.mrf.mxu1 }
 0x202   :  { %v256_v51 = vadd.f32 %v255_v49, %v254_v48  ;;  %v3250_v52 = vpop.f32.mrf.mxu1 }
 0x204   :  { %v257_v53 = vrot.slane %v256_v51, 2 }
 0x206   :  { %v258_v54 = vadd.f32 %v257_v53, %v256_v51 }
 0x208   :  { %v259_v55 = vrot.slane %v258_v54, 1 }
 0x20a   :  { %v260_v56 = vadd.f32 %v259_v55, %v258_v54  ;;  %v2914_v55 = vld [vmem:[%s4015_s5 + $0x7] ss:$0 sm:$0xff] }
 0x20c   :  { %v261_v57 = vmul.f32 0.125, %v260_v56 }
 0x20e   :  { %v262_v58 = vsub.f32 %v250_v46, %v261_v57  ;;  %v2915_v57 = vld [vmem:[%s4015_s5 + $0x8] ss:$0 sm:$0xff] }
 0x210   :  { %v263_v59 = vmul.f32 %v262_v58, %v262_v58 }
 0x212   :  { %v264_v60 = vsel %vm253_vm4, %v263_v59, 0.0 }
 0x213   :  { %v265_v61 = vrot.slane %v264_v60, 4 }
 0x215   :  { %v266_v62 = vadd.f32 %v265_v61, %v264_v60 }
 0x217   :  { %v267_v63 = vrot.slane %v266_v62, 2 }
 0x219   :  { %v268_v0 = vadd.f32 %v267_v63, %v266_v62  ;;  %v3350_v63 = vld [vmem:[#allocation2 + $0xe4] ss:$16 sps:$4 sm:$0xff]  }
 0x21a   :  { %1043 = vmatprep.subr.bf16.mxu0 %v3350_v63  ;;  %v3441_v63 = vld [vmem:[#allocation2 + $0x108] ss:$16 sps:$4 sm:$0xff]  }
 0x21b   :  { %v269_v1 = vrot.slane %v268_v0, 1 }
 0x21d   :  { %v270_v2 = vadd.f32 %v269_v1, %v268_v0  ;;  %v3353_v0 = vld [vmem:[#allocation2 + $0xec] ss:$16 sps:$4 sm:$0xff]   ;;  %v3348_v1 = vld [vmem:[#allocation2 + $0xe0] ss:$16 sps:$4 sm:$0xff]  }
 0x21e   :  { %1084 = vmatprep.subr.bf16.mxu1 %v3353_v0  ;;  %v432_v0 = vlaneseq }
 0x21f   :  { %v271_v3 = vmul.f32 0.125, %v270_v2  ;;  %v3351_v2 = vld [vmem:[#allocation2 + $0xe8] ss:$16 sps:$4 sm:$0xff]  }
 0x221   :  { %v272_v4 = vadd.f32 1e-05, %v271_v3  ;;  %v3356_v3 = vld [vmem:[#allocation2 + $0xc4] ss:$16 sps:$4 sm:$0xff]  }
 0x223   :  { %3608 = vrsqrt.f32 %v272_v4  ;;  %v3359_v4 = vld [vmem:[#allocation2 + $0xcc] ss:$16 sps:$4 sm:$0xff]  }
 0x230   :  { %v3609_v5 = vpop.eup %3608 }
 0x231   :  { %v274_v7 = vmul.f32 %v3609_v5, %v262_v58  ;;  %v3354_v5 = vld [vmem:[#allocation2 + $0xc0] ss:$16 sps:$4 sm:$0xff]  }
 0x233   :  { %v281_v9 = vmul.f32 %v2906_v6, %v274_v7  ;;  %v3357_v6 = vld [vmem:[#allocation2 + $0xc8] ss:$16 sps:$4 sm:$0xff]   ;;  %v3362_v7 = vld [vmem:[#allocation2 + $0xa4] ss:$16 sps:$4 sm:$0xff]  }
 0x235   :  { %v288_v10 = vadd.f32 %v2907_v8, %v281_v9  ;;  %v3365_v8 = vld [vmem:[#allocation2 + $0xac] ss:$16 sps:$4 sm:$0xff]   ;;  %v3360_v9 = vld [vmem:[#allocation2 + $0xa0] ss:$16 sps:$4 sm:$0xff]  }
 0x237   :  { %vm289_vm5 = vcmp.gt.f32.partialorder %v288_v10, 0.0  ;;  %v290_v11 = vmul.f32 0.01, %v288_v10 }
 0x239   :  { %v291_v12 = vsel %vm289_vm5, %v288_v10, %v290_v11  ;;  %v3363_v10 = vld [vmem:[#allocation2 + $0xa8] ss:$16 sps:$4 sm:$0xff]   ;;  %v3368_v11 = vld [vmem:[#allocation2 + $0x84] ss:$16 sps:$4 sm:$0xff]  }
 0x23a   :  { %v292_v13 = vpack.c.bf16 %v291_v12, %v291_v12  ;;  %v3371_v12 = vld [vmem:[#allocation2 + $0x8c] ss:$16 sps:$4 sm:$0xff]  }
 0x23c   :  { %3260 = vmatmul.mubr.msk.bf16.vlgmr.msra.gmra.mxu0 %vm253_vm4, %v292_v13  ;;  %v3366_v13 = vld [vmem:[#allocation2 + $0x80] ss:$16 sps:$4 sm:$0xff]  }
 0x23d   :  { %1044 = vmatpush1.bf16.msra.mxu0 %v3348_v1  ;;  %v3849_v1 = vshrl.u32 %v432_v0, 7 }
 0x23e   :  { %1045 = vmatprep.subr.bf16.mxu0 %v3356_v3  ;;  %v430_v3 = vld [vmem:[%s4015_s5 + $0x9] sm:$0x3] }
 0x241   :  { %1046 = vmatpush1.bf16.msra.mxu0 %v3354_v5 }
 0x242   :  { %1047 = vmatprep.subr.bf16.mxu0 %v3362_v7 }
 0x245   :  { %1048 = vmatpush1.bf16.msra.mxu0 %v3360_v9 }
 0x246   :  { %1049 = vmatprep.subr.bf16.mxu0 %v3368_v11 }
 0x249   :  { %1050 = vmatpush1.bf16.msra.mxu0 %v3366_v13 }
 0x24a   :  { %1051 = vmatprep.subr.bf16.mxu0 %v3374_v15 }
 0x24d   :  { %1052 = vmatpush1.bf16.msra.mxu0 %v3372_v17 }
 0x24e   :  { %1053 = vmatprep.subr.bf16.mxu0 %v3380_v19 }
 0x251   :  { %1054 = vmatpush1.bf16.msra.mxu0 %v3378_v21 }
 0x252   :  { %1055 = vmatprep.subr.bf16.mxu0 %v3386_v23 }
 0x255   :  { %1056 = vmatpush1.bf16.msra.mxu0 %v3384_v25 }
 0x256   :  { %1057 = vmatprep.subr.bf16.mxu0 %v3392_v27 }
 0x259   :  { %1058 = vmatpush1.bf16.msra.mxu0 %v3390_v29 }
 0x2fc   :  { %v369_v32 = vpop.f32.mrf.mxu0 }
 0x2fd   :  { %v370_v33 = vadd.f32 %v2908_v31, %v369_v32  ;;  %v3393_v31 = vld [vmem:[#allocation2 + $0x8] ss:$16 sps:$4 sm:$0xff]   ;;  %v3398_v32 = vld [vmem:[#allocation2 + $0x1e4] ss:$16 sps:$4 sm:$0xff]  }
 0x2fe   :  { %v3261_v34 = vpop.f32.mrf.mxu0  ;;  %1059 = vmatprep.subr.bf16.mxu0 %v3398_v32 }
 0x2ff   :  { %v377_v35 = vrot.slane %v370_v33, 4  ;;  %v3396_v34 = vld [vmem:[#allocation2 + $0x1e0] ss:$16 sps:$4 sm:$0xff]  }
 0x300   :  { %v372_v36 = vpop.f32.mrf.mxu0  ;;  %1060 = vmatpush2.bf16.msra.mxu0 %v3396_v34 }
 0x301   :  { %v378_v37 = vadd.f32 %v377_v35, %v370_v33  ;;  %v3399_v35 = vld [vmem:[#allocation2 + $0x1e8] ss:$16 sps:$4 sm:$0xff]   ;;  %v3404_v36 = vld [vmem:[#allocation2 + $0x1c4] ss:$16 sps:$4 sm:$0xff]  }
 0x302   :  { %v3262_v38 = vpop.f32.mrf.mxu0  ;;  %1061 = vmatprep.subr.bf16.mxu0 %v3404_v36 }
 0x303   :  { %v379_v39 = vrot.slane %v378_v37, 2  ;;  %v3402_v38 = vld [vmem:[#allocation2 + $0x1c0] ss:$16 sps:$4 sm:$0xff]  }
 0x304   :  { %1062 = vmatpush2.bf16.msra.mxu0 %v3402_v38 }
 0x305   :  { %v380_v40 = vadd.f32 %v379_v39, %v378_v37  ;;  %v3407_v37 = vld [vmem:[#allocation2 + $0x1cc] ss:$16 sps:$4 sm:$0xff]   ;;  %v3405_v39 = vld [vmem:[#allocation2 + $0x1c8] ss:$16 sps:$4 sm:$0xff]  }
 0x307   :  { %v381_v41 = vrot.slane %v380_v40, 1 }
 0x309   :  { %v382_v42 = vadd.f32 %v381_v41, %v380_v40  ;;  %v3410_v40 = vld [vmem:[#allocation2 + $0x1a4] ss:$16 sps:$4 sm:$0xff]   ;;  %v3413_v41 = vld [vmem:[#allocation2 + $0x1ac] ss:$16 sps:$4 sm:$0xff]  }
 0x30a   :  { %1063 = vmatprep.subr.bf16.mxu0 %v3410_v40 }
 0x30b   :  { %v383_v43 = vmul.f32 0.125, %v382_v42  ;;  %v3408_v42 = vld [vmem:[#allocation2 + $0x1a0] ss:$16 sps:$4 sm:$0xff]  }
 0x30c   :  { %1064 = vmatpush2.bf16.msra.mxu0 %v3408_v42 }
 0x30d   :  { %v384_v44 = vsub.f32 %v370_v33, %v383_v43  ;;  %v3401_v33 = vld [vmem:[#allocation2 + $0x1ec] ss:$16 sps:$4 sm:$0xff]   ;;  %v3411_v43 = vld [vmem:[#allocation2 + $0x1a8] ss:$16 sps:$4 sm:$0xff]  }
 0x30f   :  { %v385_v45 = vmul.f32 %v384_v44, %v384_v44 }
 0x311   :  { %v386_v46 = vrot.slane %v385_v45, 4 }
 0x313   :  { %v387_v47 = vadd.f32 %v386_v46, %v385_v45  ;;  %v3419_v45 = vld [vmem:[#allocation2 + $0x18c] ss:$16 sps:$4 sm:$0xff]   ;;  %v3414_v46 = vld [vmem:[#allocation2 + $0x180] ss:$16 sps:$4 sm:$0xff]  }
 0x315   :  { %v388_v48 = vrot.slane %v387_v47, 2 }
 0x317   :  { %v389_v49 = vadd.f32 %v388_v48, %v387_v47  ;;  %v3417_v47 = vld [vmem:[#allocation2 + $0x188] ss:$16 sps:$4 sm:$0xff]   ;;  %v3422_v48 = vld [vmem:[#allocation2 + $0x164] ss:$16 sps:$4 sm:$0xff]  }
 0x319   :  { %v390_v50 = vrot.slane %v389_v49, 1 }
 0x31b   :  { %v391_v51 = vadd.f32 %v390_v50, %v389_v49  ;;  %v3425_v49 = vld [vmem:[#allocation2 + $0x16c] ss:$16 sps:$4 sm:$0xff]   ;;  %v3420_v50 = vld [vmem:[#allocation2 + $0x160] ss:$16 sps:$4 sm:$0xff]  }
 0x31d   :  { %v392_v52 = vmul.f32 0.125, %v391_v51  ;;  %v3423_v51 = vld [vmem:[#allocation2 + $0x168] ss:$16 sps:$4 sm:$0xff]  }
 0x31f   :  { %v393_v53 = vadd.f32 1e-05, %v392_v52  ;;  %v3428_v52 = vld [vmem:[#allocation2 + $0x144] ss:$16 sps:$4 sm:$0xff]  }
 0x321   :  { %3610 = vrsqrt.f32 %v393_v53  ;;  %v3431_v53 = vld [vmem:[#allocation2 + $0x14c] ss:$16 sps:$4 sm:$0xff]  }
 0x32e   :  { %v3611_v54 = vpop.eup %3610 }
 0x32f   :  { %v395_v56 = vmul.f32 %v3611_v54, %v384_v44  ;;  %v3416_v44 = vld [vmem:[#allocation2 + $0x184] ss:$16 sps:$4 sm:$0xff]   ;;  %v3426_v54 = vld [vmem:[#allocation2 + $0x140] ss:$16 sps:$4 sm:$0xff]  }
 0x330   :  { %1065 = vmatprep.subr.bf16.mxu0 %v3416_v44 }
 0x331   :  { %v402_v58 = vmul.f32 %v2914_v55, %v395_v56  ;;  %1066 = vmatpush2.bf16.msra.mxu0 %v3414_v46  ;;  %v3429_v55 = vld [vmem:[#allocation2 + $0x148] ss:$16 sps:$4 sm:$0xff]   ;;  %v3432_v56 = vld [vmem:[#allocation2 + $0x120] ss:$16 sps:$4 sm:$0xff]  }
 0x332   :  { %1067 = vmatprep.subr.bf16.mxu0 %v3422_v48  ;;  %v563_v48 = vld [vmem:[%s4015_s5 + $0xb] sm:$0x3] }
 0x333   :  { %v409_v59 = vadd.f32 %v2915_v57, %v402_v58  ;;  %v3434_v57 = vld [vmem:[#allocation2 + $0x124] ss:$16 sps:$4 sm:$0xff]   ;;  %v3435_v58 = vld [vmem:[#allocation2 + $0x128] ss:$16 sps:$4 sm:$0xff]  }
 0x335   :  { %vm410_vm6 = vcmp.gt.f32.partialorder %v409_v59, 0.0  ;;  %v411_v60 = vmul.f32 0.01, %v409_v59  ;;  %1068 = vmatpush2.bf16.msra.mxu0 %v3420_v50 }
 0x336   :  { %1069 = vmatprep.subr.bf16.mxu0 %v3428_v52 }
 0x337   :  { %v412_v61 = vsel %vm410_vm6, %v409_v59, %v411_v60  ;;  %v3437_v59 = vld [vmem:[#allocation2 + $0x12c] ss:$16 sps:$4 sm:$0xff]   ;;  %v3440_v60 = vld [vmem:[#allocation2 + $0x104] ss:$16 sps:$4 sm:$0xff]   ;;  %vm2888_vm6 = vcmask 261248  }
 0x338   :  { %v413_v62 = vpack.c.bf16 %v412_v61, %v412_v61  ;;  %v3443_v61 = vld [vmem:[#allocation2 + $0x10c] ss:$16 sps:$4 sm:$0xff]  }
 0x339   :  { %1070 = vmatpush2.bf16.msra.mxu0 %v3426_v54 }
 0x33a   :  { %555 = vmatmul.mubr.bf16.vlgmr.msra.gmra.mxu1 %v413_v62  ;;  %1071 = vmatprep.subr.bf16.mxu0 %v3434_v57  ;;  %v3438_v62 = vld [vmem:[#allocation2 + $0x100] ss:$16 sps:$4 sm:$0xff]  }
 0x33b   :  { %1085 = vmatpush1.bf16.msra.mxu1 %v3351_v2  ;;  %v3852_v2 = vsub.s32 0, %v3849_v1 }
 0x33c   :  { %1086 = vmatprep.subr.bf16.mxu1 %v3359_v4  ;;  %v3858_v4 = vsub.s32 1, %v3849_v1 }
 0x33d   :  { %1072 = vmatpush2.bf16.msra.mxu0 %v3432_v56  ;;  %v435_v5 = vrot.slane %v430_v3, %v3852_v2  ;;  %v607_v50 = vrot.slane %v563_v48, %v3852_v2 }
 0x33e   :  { %1073 = vmatprep.subr.bf16.mxu0 %v3440_v60  ;;  %v611_v54 = vrot.slane %v563_v48, %v3858_v4 }
 0x33f   :  { %1087 = vmatpush1.bf16.msra.mxu1 %v3357_v6  ;;  %v439_v6 = vrot.slane %v430_v3, %v3858_v4 }
 0x340   :  { %1088 = vmatprep.subr.bf16.mxu1 %v3365_v8 }
 0x341   :  { %1074 = vmatpush2.bf16.msra.mxu0 %v3438_v62 }
 0x343   :  { %1089 = vmatpush1.bf16.msra.mxu1 %v3363_v10 }
 0x344   :  { %1090 = vmatprep.subr.bf16.mxu1 %v3371_v12 }
 0x347   :  { %1091 = vmatpush1.bf16.msra.mxu1 %v3369_v14 }
 0x348   :  { %1092 = vmatprep.subr.bf16.mxu1 %v3377_v16 }
 0x34b   :  { %1093 = vmatpush1.bf16.msra.mxu1 %v3375_v18 }
 0x34c   :  { %1094 = vmatprep.subr.bf16.mxu1 %v3383_v20 }
 0x34f   :  { %1095 = vmatpush1.bf16.msra.mxu1 %v3381_v22 }
 0x350   :  { %1096 = vmatprep.subr.bf16.mxu1 %v3389_v24 }
 0x353   :  { %1097 = vmatpush1.bf16.msra.mxu1 %v3387_v26 }
 0x354   :  { %1098 = vmatprep.subr.bf16.mxu1 %v3395_v28 }
 0x357   :  { %1099 = vmatpush1.bf16.msra.mxu1 %v3393_v31 }
 0x358   :  { %1100 = vmatprep.subr.bf16.mxu1 %v3401_v33 }
 0x35b   :  { %1101 = vmatpush2.bf16.msra.mxu1 %v3399_v35 }
 0x35c   :  { %1102 = vmatprep.subr.bf16.mxu1 %v3407_v37 }
 0x35f   :  { %1103 = vmatpush2.bf16.msra.mxu1 %v3405_v39 }
 0x360   :  { %1104 = vmatprep.subr.bf16.mxu1 %v3413_v41 }
 0x363   :  { %1105 = vmatpush2.bf16.msra.mxu1 %v3411_v43 }
 0x364   :  { %1106 = vmatprep.subr.bf16.mxu1 %v3419_v45 }
 0x367   :  { %1107 = vmatpush2.bf16.msra.mxu1 %v3417_v47 }
 0x368   :  { %1108 = vmatprep.subr.bf16.mxu1 %v3425_v49  ;;  %v564_v49 = vld [vmem:[%s4015_s5 + $0xd] sm:$0x3] }
 0x36b   :  { %1109 = vmatpush2.bf16.msra.mxu1 %v3423_v51 }
 0x36c   :  { %1110 = vmatprep.subr.bf16.mxu1 %v3431_v53  ;;  %v620_v53 = vrot.slane %v564_v49, %v3852_v2 }
 0x36f   :  { %1111 = vmatpush2.bf16.msra.mxu1 %v3429_v55 }
 0x370   :  { %1112 = vmatprep.subr.bf16.mxu1 %v3437_v59 }
 0x373   :  { %1113 = vmatpush2.bf16.msra.mxu1 %v3435_v58  ;;  %v624_v58 = vrot.slane %v564_v49, %v3858_v4 }
 0x374   :  { %1114 = vmatprep.subr.bf16.mxu1 %v3443_v61 }
 0x377   :  { %1115 = vmatpush2.bf16.msra.mxu1 %v3441_v63 }
 0x3fa   :  { %v556_v7 = vpop.f32.mrf.mxu1 }
 0x3fb   :  { %v557_v8 = vadd.f32 %v556_v7, %v435_v5  ;;  %v3444_v7 = vld [vmem:[#allocation7 + $0x90] sm:$0xff]  }
 0x3fc   :  { %v558_v9 = vpop.f32.mrf.mxu1  ;;  %3154 = vmatprep.subr.bf16.mxu0 %v3444_v7 }
 0x3fd   :  { %v565_v10 = vrot.slane %v557_v8, 4  ;;  %v559_v11 = vadd.f32 %v558_v9, %v439_v6  ;;  %v3446_v9 = vld [vmem:[#allocation7 + $0x50] sm:$0xff]  }
 0x3fe   :  { %v560_v12 = vpop.f32.mrf.mxu1 }
 0x3ff   :  { %v566_v13 = vadd.f32 %v565_v10, %v557_v8  ;;  %v571_v14 = vrot.slane %v559_v11, 4  ;;  %v3447_v10 = vld [vmem:[#allocation7 + $0xd0] sm:$0xff]   ;;  %v3449_v12 = vld [vmem:[#allocation7 + $0x108] sm:$0xff]  }
 0x400   :  { %v561_v15 = vpop.f32.mrf.mxu1 }
 0x401   :  { %v567_v16 = vrot.slane %v566_v13, 2  ;;  %v572_v17 = vadd.f32 %v571_v14, %v559_v11  ;;  %v3451_v14 = vld [vmem:[#allocation7 + $0xc8] sm:$0xff]   ;;  %v3452_v15 = vld [vmem:[#allocation7 + $0x80] sm:$0xff]  }
 0x403   :  { %v568_v18 = vadd.f32 %v567_v16, %v566_v13  ;;  %v573_v19 = vrot.slane %v572_v17, 2  ;;  %v3450_v13 = vld [vmem:[#allocation7 + $0x48] sm:$0xff]   ;;  %v3453_v16 = vld [vmem:[#allocation7 + $0x100] sm:$0xff]  }
 0x405   :  { %v569_v20 = vrot.slane %v568_v18, 1  ;;  %v574_v21 = vadd.f32 %v573_v19, %v572_v17  ;;  %v3454_v17 = vld [vmem:[#allocation7 + $0x40] sm:$0xff]   ;;  %v3456_v19 = vld [vmem:[#allocation7 + $0x78] sm:$0xff]  }
 0x407   :  { %v570_v22 = vadd.f32 %v569_v20, %v568_v18  ;;  %v575_v23 = vrot.slane %v574_v21, 1  ;;  %v3455_v18 = vld [vmem:[#allocation7 + $0xc0] sm:$0xff]   ;;  %v3457_v20 = vld [vmem:[#allocation7 + $0xf8] sm:$0xff]  }
 0x409   :  { %v577_v24 = vmul.f32 0.125, %v570_v22  ;;  %v576_v25 = vadd.f32 %v575_v23, %v574_v21  ;;  %v3458_v21 = vld [vmem:[#allocation7 + $0x38] sm:$0xff]   ;;  %v3460_v23 = vld [vmem:[#allocation7 + $0x70] sm:$0xff]  }
 0x40a   :  { %v3459_v22 = vld [vmem:[#allocation7 + $0xb8] sm:$0xff]  }
 0x40b   :  { %v579_v26 = vsub.f32 %v557_v8, %v577_v24  ;;  %v578_v27 = vmul.f32 0.125, %v576_v25  ;;  %v3445_v8 = vld [vmem:[#allocation7 + $0x110] sm:$0xff]  }
 0x40c   :  { %3176 = vmatprep.subr.bf16.mxu1 %v3445_v8  ;;  %v3461_v24 = vld [vmem:[#allocation7 + $0xf0] sm:$0xff]  }
 0x40d   :  { %v581_v28 = vmul.f32 %v579_v26, %v579_v26  ;;  %v580_v29 = vsub.f32 %v559_v11, %v578_v27  ;;  %v3448_v11 = vld [vmem:[#allocation7 + $0x88] sm:$0xff]   ;;  %v3462_v25 = vld [vmem:[#allocation7 + $0x30] sm:$0xff]  }
 0x40e   :  { %v3464_v27 = vld [vmem:[#allocation7 + $0x68] sm:$0xff]  }
 0x40f   :  { %v583_v31 = vrot.slane %v581_v28, 4  ;;  %v582_v32 = vmul.f32 %v580_v29, %v580_v29 }
 0x411   :  { %v584_v33 = vadd.f32 %v583_v31, %v581_v28  ;;  %v589_v34 = vrot.slane %v582_v32, 4  ;;  %v3465_v28 = vld [vmem:[#allocation7 + $0xe8] sm:$0xff]  }
 0x412   :  { %v3467_v31 = vld [vmem:[#allocation7 + $0xa8] sm:$0xff]  }
 0x413   :  { %v585_v35 = vrot.slane %v584_v33, 2  ;;  %v590_v36 = vadd.f32 %v589_v34, %v582_v32  ;;  %v3468_v32 = vld [vmem:[#allocation7 + $0x60] sm:$0xff]  }
 0x414   :  { %v3470_v34 = vld [vmem:[#allocation7 + $0x20] sm:$0xff]  }
 0x415   :  { %v586_v37 = vadd.f32 %v585_v35, %v584_v33  ;;  %v591_v38 = vrot.slane %v590_v36, 2  ;;  %v3469_v33 = vld [vmem:[#allocation7 + $0xe0] sm:$0xff]  }
 0x416   :  { %v3471_v35 = vld [vmem:[#allocation7 + $0xa0] sm:$0xff]  }
 0x417   :  { %v587_v39 = vrot.slane %v586_v37, 1  ;;  %v592_v40 = vadd.f32 %v591_v38, %v590_v36  ;;  %v3472_v36 = vld [vmem:[#allocation7 + $0x58] sm:$0xff]  }
 0x418   :  { %v3474_v38 = vld [vmem:[#allocation7 + $0x18] sm:$0xff]  }
 0x419   :  { %v588_v41 = vadd.f32 %v587_v39, %v586_v37  ;;  %v593_v42 = vrot.slane %v592_v40, 1  ;;  %v3473_v37 = vld [vmem:[#allocation7 + $0xd8] sm:$0xff]  }
 0x41a   :  { %v3475_v39 = vld [vmem:[#allocation7 + $0x98] sm:$0xff]  }
 0x41b   :  { %v595_v43 = vmul.f32 0.125, %v588_v41  ;;  %v594_v44 = vadd.f32 %v593_v42, %v592_v40  ;;  %v3873_v40 = vsub.s32 2, %v3849_v1  ;;  %v701_v41 = vld [vmem:[%s4015_s5 + $0xf] sm:$0xf]  ;;  %v3879_v42 = vsub.s32 3, %v3849_v1 }
 0x41d   :  { %v597_v45 = vadd.f32 1e-05, %v595_v43  ;;  %v596_v46 = vmul.f32 0.125, %v594_v44  ;;  %v706_v43 = vrot.slane %v701_v41, %v3852_v2  ;;  %v714_v44 = vrot.slane %v701_v41, %v3873_v40 }
 0x41f   :  { %3612 = vrsqrt.f32 %v597_v45  ;;  %v598_v47 = vadd.f32 1e-05, %v596_v46  ;;  %v710_v45 = vrot.slane %v701_v41, %v3858_v4  ;;  %v718_v46 = vrot.slane %v701_v41, %v3879_v42 }
 0x421   :  { %3614 = vrsqrt.f32 %v598_v47 }
 0x42c   :  { %v3613_v51 = vpop.eup %3612 }
 0x42d   :  { %v601_v52 = vmul.f32 %v3613_v51, %v579_v26  ;;  %v3463_v26 = vld [vmem:[#allocation7 + $0xb0] sm:$0xff]  }
 0x42e   :  { %v3615_v55 = vpop.eup %3614 }
 0x42f   :  { %v614_v56 = vmul.f32 %v607_v50, %v601_v52  ;;  %v602_v57 = vmul.f32 %v3615_v55, %v580_v29  ;;  %v3466_v29 = vld [vmem:[#allocation7 + $0x28] sm:$0xff]  }
 0x431   :  { %v627_v59 = vadd.f32 %v620_v53, %v614_v56  ;;  %v615_v60 = vmul.f32 %v611_v54, %v602_v57 }
 0x433   :  { %v628_v61 = vadd.f32 %v624_v58, %v615_v60  ;;  %vm629_vm7 = vcmp.gt.f32.partialorder %v627_v59, 0.0  ;;  %v631_v62 = vmul.f32 0.01, %v627_v59 }
 0x435   :  { %vm630_vm8 = vcmp.gt.f32.partialorder %v628_v61, 0.0  ;;  %v632_v63 = vmul.f32 0.01, %v628_v61  ;;  %v633_v0 = vsel %vm629_vm7, %v627_v59, %v631_v62 }
 0x436   :  { %v635_v6 = vpack.c.bf16 %v633_v0, %v633_v0 }
 0x437   :  { %v634_v3 = vsel %vm630_vm8, %v628_v61, %v632_v63 }
 0x438   :  { %v636_v5 = vpack.c.bf16 %v634_v3, %v634_v3 }
 0x43a   :  { %1075 = vmatprep.mubr.bf16.mxu0 %v636_v5  ;;  %1116 = vmatprep.mubr.bf16.mxu1 %v636_v5 }
 0x43b   :  { %1076 = vmatmul.mubr.bf16.vlgmr.msra.gmra.mxu0 %v635_v6  ;;  %1117 = vmatmul.mubr.bf16.vlgmr.msra.gmra.mxu1 %v635_v6 }
 0x43c   :  { %3155 = vmatpush3.bf16.msra.mxu0 %v3446_v9  ;;  %3177 = vmatpush3.bf16.msra.mxu1 %v3447_v10 }
 0x43d   :  { %3156 = vmatprep.subr.bf16.mxu0 %v3448_v11  ;;  %3178 = vmatprep.subr.bf16.mxu1 %v3449_v12 }
 0x440   :  { %3157 = vmatpush3.bf16.msra.mxu0 %v3450_v13  ;;  %3179 = vmatpush3.bf16.msra.mxu1 %v3451_v14 }
 0x441   :  { %3158 = vmatprep.subr.bf16.mxu0 %v3452_v15  ;;  %3180 = vmatprep.subr.bf16.mxu1 %v3453_v16 }
 0x444   :  { %3159 = vmatpush3.bf16.msra.mxu0 %v3454_v17  ;;  %3181 = vmatpush3.bf16.msra.mxu1 %v3455_v18 }
 0x445   :  { %3160 = vmatprep.subr.bf16.mxu0 %v3456_v19  ;;  %3182 = vmatprep.subr.bf16.mxu1 %v3457_v20 }
 0x448   :  { %3161 = vmatpush3.bf16.msra.mxu0 %v3458_v21  ;;  %3183 = vmatpush3.bf16.msra.mxu1 %v3459_v22 }
 0x449   :  { %3162 = vmatprep.subr.bf16.mxu0 %v3460_v23  ;;  %3184 = vmatprep.subr.bf16.mxu1 %v3461_v24 }
 0x44c   :  { %3163 = vmatpush3.bf16.msra.mxu0 %v3462_v25  ;;  %3185 = vmatpush3.bf16.msra.mxu1 %v3463_v26 }
 0x44d   :  { %3164 = vmatprep.subr.bf16.mxu0 %v3464_v27  ;;  %3186 = vmatprep.subr.bf16.mxu1 %v3465_v28 }
 0x450   :  { %3165 = vmatpush3.bf16.msra.mxu0 %v3466_v29  ;;  %3187 = vmatpush3.bf16.msra.mxu1 %v3467_v31 }
 0x451   :  { %3166 = vmatprep.subr.bf16.mxu0 %v3468_v32  ;;  %3188 = vmatprep.subr.bf16.mxu1 %v3469_v33 }
 0x454   :  { %3167 = vmatpush3.bf16.msra.mxu0 %v3470_v34  ;;  %3189 = vmatpush3.bf16.msra.mxu1 %v3471_v35 }
 0x455   :  { %3168 = vmatprep.subr.bf16.mxu0 %v3472_v36  ;;  %3190 = vmatprep.subr.bf16.mxu1 %v3473_v37 }
 0x458   :  { %3169 = vmatpush3.bf16.msra.mxu0 %v3474_v38  ;;  %3191 = vmatpush3.bf16.msra.mxu1 %v3475_v39 }
 0x4fb   :  { %v1077_v47 = vpop.f32.mrf.mxu0  ;;  %v1118_v48 = vpop.f32.mrf.mxu1 }
 0x4fc   :  { %v1078_v49 = vadd.f32 %v1077_v47, %v706_v43  ;;  %v1119_v50 = vadd.f32 %v1118_v48, %v714_v44 }
 0x4fd   :  { %v1079_v51 = vpop.f32.mrf.mxu0  ;;  %v1120_v52 = vpop.f32.mrf.mxu1 }
 0x4fe   :  { %v1127_v53 = vrot.slane %v1078_v49, 4  ;;  %v1139_v54 = vrot.slane %v1119_v50, 4  ;;  %v1080_v55 = vadd.f32 %v1079_v51, %v710_v45  ;;  %v1121_v56 = vadd.f32 %v1120_v52, %v718_v46 }
 0x4ff   :  { %v1081_v1 = vpop.f32.mrf.mxu0  ;;  %v1122_v57 = vpop.f32.mrf.mxu1 }
 0x500   :  { %v1128_v58 = vadd.f32 %v1127_v53, %v1078_v49  ;;  %v1140_v59 = vadd.f32 %v1139_v54, %v1119_v50  ;;  %v1133_v60 = vrot.slane %v1080_v55, 4  ;;  %v1145_v61 = vrot.slane %v1121_v56, 4 }
 0x501   :  { %v1082_v62 = vpop.f32.mrf.mxu0  ;;  %v1123_v63 = vpop.f32.mrf.mxu1 }
 0x502   :  { %v1129_v0 = vrot.slane %v1128_v58, 2  ;;  %v1141_v3 = vrot.slane %v1140_v59, 2  ;;  %v1134_v5 = vadd.f32 %v1133_v60, %v1080_v55  ;;  %v1146_v6 = vadd.f32 %v1145_v61, %v1121_v56 }
 0x504   :  { %v1130_v7 = vadd.f32 %v1129_v0, %v1128_v58  ;;  %v1142_v8 = vadd.f32 %v1141_v3, %v1140_v59  ;;  %v1135_v9 = vrot.slane %v1134_v5, 2  ;;  %v1147_v10 = vrot.slane %v1146_v6, 2 }
 0x506   :  { %v1131_v11 = vrot.slane %v1130_v7, 1  ;;  %v1143_v12 = vrot.slane %v1142_v8, 1  ;;  %v1136_v13 = vadd.f32 %v1135_v9, %v1134_v5  ;;  %v1148_v14 = vadd.f32 %v1147_v10, %v1146_v6  ;;  %v1125_v6 = vld [vmem:[%s4015_s5 + $0x13] sm:$0xf] }
 0x507   :  { %v1215_v10 = vrot.slane %v1125_v6, %v3873_v40 }
 0x508   :  { %v1132_v15 = vadd.f32 %v1131_v11, %v1130_v7  ;;  %v1144_v16 = vadd.f32 %v1143_v12, %v1142_v8  ;;  %v1137_v17 = vrot.slane %v1136_v13, 1  ;;  %v1149_v18 = vrot.slane %v1148_v14, 1  ;;  %v1126_v7 = vld [vmem:[%s4015_s5 + $0x17] sm:$0xf] }
 0x509   :  { %v1207_v8 = vrot.slane %v1125_v6, %v3852_v2 }
 0x50a   :  { %v1151_v19 = vmul.f32 0.125, %v1132_v15  ;;  %v1153_v20 = vmul.f32 0.125, %v1144_v16  ;;  %v1138_v21 = vadd.f32 %v1137_v17, %v1136_v13  ;;  %v1150_v22 = vadd.f32 %v1149_v18, %v1148_v14 }
 0x50b   :  { %v1232_v13 = vrot.slane %v1126_v7, %v3852_v2  ;;  %v1211_v14 = vrot.slane %v1125_v6, %v3858_v4  ;;  %v1240_v17 = vrot.slane %v1126_v7, %v3873_v40  ;;  %v1219_v18 = vrot.slane %v1125_v6, %v3879_v42 }
 0x50c   :  { %v1155_v23 = vsub.f32 %v1078_v49, %v1151_v19  ;;  %v1157_v24 = vsub.f32 %v1119_v50, %v1153_v20  ;;  %v1152_v25 = vmul.f32 0.125, %v1138_v21  ;;  %v1154_v26 = vmul.f32 0.125, %v1150_v22 }
 0x50d   :  { %v1236_v22 = vrot.slane %v1126_v7, %v3858_v4 }
 0x50e   :  { %v1159_v27 = vmul.f32 %v1155_v23, %v1155_v23  ;;  %v1161_v28 = vmul.f32 %v1157_v24, %v1157_v24  ;;  %v1156_v29 = vsub.f32 %v1080_v55, %v1152_v25  ;;  %v1158_v31 = vsub.f32 %v1121_v56, %v1154_v26 }
 0x510   :  { %v1163_v32 = vrot.slane %v1159_v27, 4  ;;  %v1175_v33 = vrot.slane %v1161_v28, 4  ;;  %v1160_v34 = vmul.f32 %v1156_v29, %v1156_v29  ;;  %v1162_v35 = vmul.f32 %v1158_v31, %v1158_v31 }
 0x512   :  { %v1164_v36 = vadd.f32 %v1163_v32, %v1159_v27  ;;  %v1176_v37 = vadd.f32 %v1175_v33, %v1161_v28  ;;  %v1169_v38 = vrot.slane %v1160_v34, 4  ;;  %v1181_v39 = vrot.slane %v1162_v35, 4 }
 0x513   :  { %v1244_v27 = vrot.slane %v1126_v7, %v3879_v42 }
 0x514   :  { %v1165_v41 = vrot.slane %v1164_v36, 2  ;;  %v1177_v43 = vrot.slane %v1176_v37, 2  ;;  %v1170_v44 = vadd.f32 %v1169_v38, %v1160_v34  ;;  %v1182_v45 = vadd.f32 %v1181_v39, %v1162_v35 }
 0x516   :  { %v1166_v46 = vadd.f32 %v1165_v41, %v1164_v36  ;;  %v1178_v47 = vadd.f32 %v1177_v43, %v1176_v37  ;;  %v1171_v48 = vrot.slane %v1170_v44, 2  ;;  %v1183_v49 = vrot.slane %v1182_v45, 2 }
 0x518   :  { %v1167_v50 = vrot.slane %v1166_v46, 1  ;;  %v1179_v51 = vrot.slane %v1178_v47, 1  ;;  %v1172_v52 = vadd.f32 %v1171_v48, %v1170_v44  ;;  %v1184_v53 = vadd.f32 %v1183_v49, %v1182_v45 }
 0x51a   :  { %v1168_v54 = vadd.f32 %v1167_v50, %v1166_v46  ;;  %v1180_v55 = vadd.f32 %v1179_v51, %v1178_v47  ;;  %v1173_v56 = vrot.slane %v1172_v52, 1  ;;  %v1185_v1 = vrot.slane %v1184_v53, 1 }
 0x51c   :  { %v1187_v57 = vmul.f32 0.125, %v1168_v54  ;;  %v1189_v58 = vmul.f32 0.125, %v1180_v55  ;;  %v1174_v59 = vadd.f32 %v1173_v56, %v1172_v52  ;;  %v1186_v60 = vadd.f32 %v1185_v1, %v1184_v53  ;;  %v3028_v54 = vld [vmem:[%s4015_s5 + $0x1b] ss:$0 sm:$0xff] }
 0x51e   :  { %v1191_v61 = vadd.f32 1e-05, %v1187_v57  ;;  %v1193_v62 = vadd.f32 1e-05, %v1189_v58  ;;  %v1188_v63 = vmul.f32 0.125, %v1174_v59  ;;  %v1190_v0 = vmul.f32 0.125, %v1186_v60 }
 0x520   :  { %3616 = vrsqrt.f32 %v1191_v61  ;;  %v1192_v3 = vadd.f32 1e-05, %v1188_v63  ;;  %v1194_v5 = vadd.f32 1e-05, %v1190_v0  ;;  %v3903_v63 = vld [vmem:[#allocation2 + $0x208] sm:$0xff] }
 0x521   :  { %3618 = vrsqrt.f32 %v1193_v62  ;;  %v1627_v62 = vld [vmem:[#allocation2 + $0x200] sm:$0xff] }
 0x522   :  { %3620 = vrsqrt.f32 %v1192_v3  ;;  %v3030_v0 = vcombine.high %v1627_v62, %v1627_v62  ;;  %v3029_v3 = vcombine.low %v1627_v62, %v1627_v62  ;;  %v3534_v62 = vld [vmem:[#allocation4 + $0x150] ss:$8 sps:$4 sm:$0xff]  }
 0x523   :  { %3622 = vrsqrt.f32 %v1194_v5  ;;  %v3032_v5 = vcombine.high %v3903_v63, %v3903_v63 }
 0x524   :  { %3033 = vmatprep.subr.msk.bf16.mxu0 %vm1668_vm13, %v3030_v0  ;;  %v1670_v6 = vsel %vm1668_vm13, %v3029_v3, 0  ;;  %v3540_v0 = vld [vmem:[#allocation4 + $0x140] ss:$8 sps:$4 sm:$0xff]   ;;  %v3548_v3 = vld [vmem:[#allocation4 + $0x134] ss:$8 sps:$4 sm:$0xff]  }
 0x52d   :  { %v3617_v9 = vpop.eup %3616 }
 0x52e   :  { %v3619_v11 = vpop.eup %3618  ;;  %v1199_v12 = vmul.f32 %v3617_v9, %v1155_v23 }
 0x52f   :  { %v3621_v15 = vpop.eup %3620  ;;  %v1201_v16 = vmul.f32 %v3619_v11, %v1157_v24 }
 0x530   :  { %v3623_v19 = vpop.eup %3622  ;;  %v1224_v20 = vmul.f32 %v1207_v8, %v1199_v12  ;;  %v1200_v21 = vmul.f32 %v3621_v15, %v1156_v29  ;;  %v3640_v8 = vld [vmem:[%s4010_s0] sm:$0xff]  ;;  %v3495_v15 = vld [vmem:[#allocation4 + $0x1e0] ss:$8 sps:$4 sm:$0xff]  }
 0x531   :  { %v1226_v25 = vmul.f32 %v1215_v10, %v1201_v16  ;;  %v1202_v26 = vmul.f32 %v3623_v19, %v1158_v31  ;;  %v3497_v16 = vld [vmem:[#allocation4 + $0x1e4] ss:$8 sps:$4 sm:$0xff]   ;;  %v3507_v19 = vld [vmem:[#allocation4 + $0x1c0] ss:$8 sps:$4 sm:$0xff]  }
 0x532   :  { %v1249_v23 = vadd.f32 %v1232_v13, %v1224_v20  ;;  %v1225_v28 = vmul.f32 %v1211_v14, %v1200_v21  ;;  %v3489_v13 = vld [vmem:[#allocation4 + $0x1f0] ss:$8 sps:$4 sm:$0xff]   ;;  %v3491_v14 = vld [vmem:[#allocation4 + $0x1f4] ss:$8 sps:$4 sm:$0xff]   ;;  %v3509_v20 = vld [vmem:[#allocation4 + $0x1c4] ss:$8 sps:$4 sm:$0xff]  }
 0x533   :  { %v1251_v32 = vadd.f32 %v1240_v17, %v1226_v25  ;;  %v1227_v33 = vmul.f32 %v1219_v18, %v1202_v26  ;;  %2204 = vmatprep.subr.bf16.mxu1 %v3491_v14  ;;  %v3501_v17 = vld [vmem:[#allocation4 + $0x1d0] ss:$8 sps:$4 sm:$0xff]   ;;  %v3503_v18 = vld [vmem:[#allocation4 + $0x1d4] ss:$8 sps:$4 sm:$0xff]   ;;  %v3519_v25 = vld [vmem:[#allocation4 + $0x1a0] ss:$8 sps:$4 sm:$0xff]  }
 0x534   :  { %v1250_v34 = vadd.f32 %v1236_v22, %v1225_v28  ;;  %vm1253_vm9 = vcmp.gt.f32.partialorder %v1249_v23, 0.0  ;;  %v1257_v24 = vmul.f32 0.01, %v1249_v23  ;;  %v3513_v21 = vld [vmem:[#allocation4 + $0x1b0] ss:$8 sps:$4 sm:$0xff]  }
 0x535   :  { %v1252_v35 = vadd.f32 %v1244_v27, %v1227_v33  ;;  %vm1255_vm10 = vcmp.gt.f32.partialorder %v1251_v32, 0.0  ;;  %v1259_v36 = vmul.f32 0.01, %v1251_v32  ;;  %v3515_v22 = vld [vmem:[#allocation4 + $0x1b4] ss:$8 sps:$4 sm:$0xff]  }
 0x536   :  { %vm1254_vm11 = vcmp.gt.f32.partialorder %v1250_v34, 0.0  ;;  %v1258_v37 = vmul.f32 0.01, %v1250_v34  ;;  %v1261_v38 = vsel %vm1253_vm9, %v1249_v23, %v1257_v24  ;;  %v3521_v26 = vld [vmem:[#allocation4 + $0x1a4] ss:$8 sps:$4 sm:$0xff]  }
 0x537   :  { %vm1256_vm12 = vcmp.gt.f32.partialorder %v1252_v35, 0.0  ;;  %v1260_v29 = vmul.f32 0.01, %v1252_v35  ;;  %v1263_v41 = vsel %vm1255_vm10, %v1251_v32, %v1259_v36  ;;  %v1265_v45 = vpack.c.bf16 %v1261_v38, %v1261_v38  ;;  %v3525_v27 = vld [vmem:[#allocation4 + $0x190] ss:$8 sps:$4 sm:$0xff]  }
 0x538   :  { %v1262_v39 = vsel %vm1254_vm11, %v1250_v34, %v1258_v37  ;;  %v1267_v46 = vpack.c.bf16 %v1263_v41, %v1263_v41  ;;  %v3527_v23 = vld [vmem:[#allocation4 + $0x194] ss:$8 sps:$4 sm:$0xff]   ;;  %v3531_v28 = vld [vmem:[#allocation4 + $0x180] ss:$8 sps:$4 sm:$0xff]   ;;  %v3533_v32 = vld [vmem:[#allocation4 + $0x184] ss:$8 sps:$4 sm:$0xff]  }
 0x539   :  { %v1266_v31 = vpack.c.bf16 %v1262_v39, %v1262_v39  ;;  %v1264_v43 = vsel %vm1256_vm12, %v1252_v35, %v1260_v29  ;;  %v3537_v33 = vld [vmem:[#allocation4 + $0x270] ss:$8 sps:$4 sm:$0xff]   ;;  %v3539_v34 = vld [vmem:[#allocation4 + $0x274] ss:$8 sps:$4 sm:$0xff]   ;;  %v3543_v24 = vld [vmem:[#allocation4 + $0x260] ss:$8 sps:$4 sm:$0xff]   ;;  %v3031_v39 = vcombine.low %v3903_v63, %v3903_v63 }
 0x53a   :  { %v1268_v44 = vpack.c.bf16 %v1264_v43, %v1264_v43  ;;  %v3545_v35 = vld [vmem:[#allocation4 + $0x264] ss:$8 sps:$4 sm:$0xff]   ;;  %v3549_v36 = vld [vmem:[#allocation4 + $0x250] ss:$8 sps:$4 sm:$0xff]   ;;  %v3551_v37 = vld [vmem:[#allocation4 + $0x254] ss:$8 sps:$4 sm:$0xff]  }
 0x53b   :  { %1557 = vmatprep.mubr.bf16.mxu0 %v1266_v31  ;;  %v3555_v29 = vld [vmem:[#allocation4 + $0x240] ss:$8 sps:$4 sm:$0xff]   ;;  %v3557_v38 = vld [vmem:[#allocation4 + $0x244] ss:$8 sps:$4 sm:$0xff]   ;;  %v1676_v41 = vsel %vm1668_vm13, %v3031_v39, 0 }
 0x53c   :  { %1597 = vmatprep.mubr.bf16.mxu1 %v1268_v44  ;;  %1558 = vmatmul.mubr.bf16.vlgmr.msra.gmra.mxu0 %v1265_v45  ;;  %v3482_v31 = vld [vmem:[#allocation4 + $0xf4] ss:$8 sps:$4 sm:$0xff]   ;;  %v3480_v44 = vld [vmem:[#allocation4 + $0xf0] ss:$8 sps:$4 sm:$0xff]   ;;  %v3485_v45 = vld [vmem:[#allocation4 + $0xe4] ss:$8 sps:$4 sm:$0xff]  }
 0x53d   :  { %1598 = vmatmul.mubr.bf16.vlgmr.msra.gmra.mxu1 %v1267_v46  ;;  %1713 = vmatprep.mubr.bf16.mxu0 %v3740_v30  ;;  %v3483_v46 = vld [vmem:[#allocation4 + $0xe0] ss:$8 sps:$4 sm:$0xff]   ;;  %v3542_v63 = vld [vmem:[#allocation4 + $0x144] ss:$8 sps:$4 sm:$0xff]  }
 0x53e   :  { %1696 = vmatpush1.bf16.msra.mxu0 %v1670_v6  ;;  %2205 = vmatpush1.bf16.msra.mxu1 %v3489_v13  ;;  %v3554_v6 = vld [vmem:[#allocation4 + $0x124] ss:$8 sps:$4 sm:$0xff]   ;;  %v3564_v14 = vld [vmem:[#allocation4 + $0x100] ss:$8 sps:$4 sm:$0xff]  }
 0x53f   :  { %3035 = vmatprep.subr.msk.bf16.mxu0 %vm1668_vm13, %v3032_v5  ;;  %2206 = vmatprep.subr.bf16.mxu1 %v3497_v16  ;;  %v3546_v5 = vld [vmem:[#allocation4 + $0x130] ss:$8 sps:$4 sm:$0xff]   ;;  %v3569_v13 = vld [vmem:[#allocation4 + $0x224] ss:$8 sps:$4 sm:$0xff]   ;;  %v3572_v16 = vld [vmem:[#allocation4 + $0x214] ss:$8 sps:$4 sm:$0xff]  }
 0x542   :  { %2207 = vmatpush1.bf16.msra.mxu1 %v3495_v15  ;;  %v3567_v15 = vld [vmem:[#allocation4 + $0x220] ss:$8 sps:$4 sm:$0xff]  }
 0x543   :  { %2208 = vmatprep.subr.bf16.mxu1 %v3503_v18  ;;  %v3575_v18 = vld [vmem:[#allocation4 + $0x204] ss:$8 sps:$4 sm:$0xff]  }
 0x546   :  { %2209 = vmatpush1.bf16.msra.mxu1 %v3501_v17  ;;  %v3570_v17 = vld [vmem:[#allocation4 + $0x210] ss:$8 sps:$4 sm:$0xff]  }
 0x547   :  { %2210 = vmatprep.subr.bf16.mxu1 %v3509_v20  ;;  %v3923_v20 = vld [vmem:[%s4016_s6] sm:$0xff] }
 0x54a   :  { %2211 = vmatpush1.bf16.msra.mxu1 %v3507_v19  ;;  %v3573_v19 = vld [vmem:[#allocation4 + $0x200] ss:$8 sps:$4 sm:$0xff]  }
 0x54b   :  { %2212 = vmatprep.subr.bf16.mxu1 %v3515_v22 }
 0x54e   :  { %2213 = vmatpush1.bf16.msra.mxu1 %v3513_v21  ;;  %v1629_v21 = vld [vmem:[%s4015_s5 + $0x1c] sm:$0xf] }
 0x54f   :  { %2214 = vmatprep.subr.bf16.mxu1 %v3521_v26  ;;  %v1634_v22 = vrot.slane %v1629_v21, %v3852_v2 }
 0x552   :  { %2215 = vmatpush1.bf16.msra.mxu1 %v3519_v25  ;;  %v1638_v25 = vrot.slane %v1629_v21, %v3858_v4 }
 0x553   :  { %2216 = vmatprep.subr.bf16.mxu1 %v3527_v23 }
 0x556   :  { %2217 = vmatpush1.bf16.msra.mxu1 %v3525_v27 }
 0x557   :  { %2218 = vmatprep.subr.bf16.mxu1 %v3533_v32 }
 0x55a   :  { %2219 = vmatpush1.bf16.msra.mxu1 %v3531_v28 }
 0x55b   :  { %2220 = vmatprep.subr.bf16.mxu1 %v3539_v34 }
 0x55e   :  { %2221 = vmatpush2.bf16.msra.mxu1 %v3537_v33 }
 0x55f   :  { %2222 = vmatprep.subr.bf16.mxu1 %v3545_v35  ;;  %v1642_v35 = vrot.slane %v1629_v21, %v3873_v40  ;;  %v3578_v40 = vld [vmem:[#allocation6 + $0x90] sm:$0xff]  }
 0x562   :  { %2223 = vmatpush2.bf16.msra.mxu1 %v3543_v24 }
 0x563   :  { %2224 = vmatprep.subr.bf16.mxu1 %v3551_v37 }
 0x566   :  { %2225 = vmatpush2.bf16.msra.mxu1 %v3549_v36  ;;  %v1646_v36 = vrot.slane %v1629_v21, %v3879_v42  ;;  %v3579_v42 = vld [vmem:[#allocation6 + $0x50] sm:$0xff]  }
 0x567   :  { %2226 = vmatprep.subr.bf16.mxu1 %v3557_v38 }
 0x56a   :  { %2227 = vmatpush2.bf16.msra.mxu1 %v3555_v29 }
 0x5fc   :  { %v3170_v47 = vpop.f32.mrf.mxu0 }
 0x5fd   :  { %v3192_v48 = vpop.f32.mrf.mxu1 }
 0x5fe   :  { %v3171_v49 = vpop.f32.mrf.mxu0 }
 0x5ff   :  { %v3172_v50 = vadd.f32 %v3171_v49, %v3170_v47  ;;  %v3193_v51 = vpop.f32.mrf.mxu1  ;;  %v3488_v47 = vld [vmem:[#allocation4 + $0xd4] ss:$8 sps:$4 sm:$0xff]   ;;  %v3494_v49 = vld [vmem:[#allocation4 + $0xc4] ss:$8 sps:$4 sm:$0xff]  }
 0x600   :  { %v3194_v52 = vadd.f32 %v3193_v51, %v3192_v48  ;;  %v3173_v53 = vpop.f32.mrf.mxu0  ;;  %v3486_v48 = vld [vmem:[#allocation4 + $0xd0] ss:$8 sps:$4 sm:$0xff]   ;;  %v3500_v51 = vld [vmem:[#allocation4 + $0xb4] ss:$8 sps:$4 sm:$0xff]  }
 0x601   :  { %v3195_v55 = vpop.f32.mrf.mxu1  ;;  %v3504_v53 = vld [vmem:[#allocation4 + $0xa0] ss:$8 sps:$4 sm:$0xff]  }
 0x602   :  { %v1600_v56 = vadd.f32 %v3194_v52, %v3172_v50  ;;  %v3174_v1 = vpop.f32.mrf.mxu0  ;;  %v3492_v50 = vld [vmem:[#allocation4 + $0xc0] ss:$8 sps:$4 sm:$0xff]   ;;  %v3498_v52 = vld [vmem:[#allocation4 + $0xb0] ss:$8 sps:$4 sm:$0xff]  }
 0x603   :  { %v3196_v57 = vpop.f32.mrf.mxu1  ;;  %v3510_v55 = vld [vmem:[#allocation4 + $0x90] ss:$8 sps:$4 sm:$0xff]   ;;  %v3516_v1 = vld [vmem:[#allocation4 + $0x80] ss:$8 sps:$4 sm:$0xff]  }
 0x604   :  { %v1612_v58 = vadd.f32 %v3028_v54, %v1600_v56  ;;  %v3512_v54 = vld [vmem:[#allocation4 + $0x94] ss:$8 sps:$4 sm:$0xff]   ;;  %v3518_v56 = vld [vmem:[#allocation4 + $0x84] ss:$8 sps:$4 sm:$0xff]  }
 0x605   :  { %v3524_v57 = vld [vmem:[#allocation4 + $0x174] ss:$8 sps:$4 sm:$0xff]  }
 0x606   :  { %v1613_v59 = vmul.f32 0.5, %v1612_v58 }
 0x608   :  { %v1614_v60 = vmul.f32 1.442695, %v1613_v59  ;;  %v3530_v59 = vld [vmem:[#allocation4 + $0x164] ss:$8 sps:$4 sm:$0xff]  }
 0x60a   :  { %3624 = vpow2.f32 %v1614_v60  ;;  %v3528_v60 = vld [vmem:[#allocation4 + $0x160] ss:$8 sps:$4 sm:$0xff]  }
 0x617   :  { %v3625_v61 = vpop.eup %3624 }
 0x618   :  { %1617 = vrot.lane.b32.xlu0 %v3625_v61, %s3741_s29  ;;  %v3536_v61 = vld [vmem:[#allocation4 + $0x154] ss:$8 sps:$4 sm:$0xff]  }
 0x61c   :  { %1622 = vrot.lane.b32.xlu0 %v1612_v58, %s3735_s13 }
 0x68a   :  { %v1618_v7 = vpop.permute.xlu0 %1617 }
 0x68b   :  { %v1620_v9 = vmul.f32 %v3640_v8, %v1618_v7  ;;  %v3552_v7 = vld [vmem:[#allocation4 + $0x120] ss:$8 sps:$4 sm:$0xff]   ;;  %v3560_v8 = vld [vmem:[#allocation4 + $0x114] ss:$8 sps:$4 sm:$0xff]  }
 0x68e   :  { %v1623_v10 = vpop.permute.xlu0 %1622 }
 0x68f   :  { %v1625_v11 = vadd.f32 %v1623_v10, %v1620_v9  ;;  %v3563_v9 = vld [vmem:[#allocation4 + $0x234] ss:$8 sps:$4 sm:$0xff]   ;;  %v3558_v10 = vld [vmem:[#allocation4 + $0x110] ss:$8 sps:$4 sm:$0xff]  }
 0x690   :  { %2228 = vmatprep.subr.bf16.mxu1 %v3563_v9 }
 0x691   :  { %v1626_v12 = vpack.c.bf16 %v1625_v11, %v1625_v11  ;;  %v3561_v11 = vld [vmem:[#allocation4 + $0x230] ss:$8 sps:$4 sm:$0xff]  }
 0x692   :  { %2229 = vmatpush2.bf16.msra.mxu1 %v3561_v11 }
 0x693   :  { %1652 = vrot.lane.b32.xlu1 %v1626_v12, %s3735_s13  ;;  %v3566_v12 = vld [vmem:[#allocation4 + $0x104] ss:$8 sps:$4 sm:$0xff]   ;;  %2230 = vmatprep.subr.bf16.mxu1 %v3569_v13 }
 0x696   :  { %2231 = vmatpush2.bf16.msra.mxu1 %v3567_v15 }
 0x697   :  { %2885 = vrot.lane.b32.xlu1 %v1612_v58, %s3733_s8  ;;  %v3522_v58 = vld [vmem:[#allocation4 + $0x170] ss:$8 sps:$4 sm:$0xff]   ;;  %2232 = vmatprep.subr.bf16.mxu1 %v3572_v16 }
 0x69a   :  { %2233 = vmatpush2.bf16.msra.mxu1 %v3570_v17 }
 0x69b   :  { %2234 = vmatprep.subr.bf16.mxu1 %v3575_v18 }
 0x69e   :  { %2235 = vmatpush2.bf16.msra.mxu1 %v3573_v19 }
 0x69f   :  { %3263 = vmatprep.subr.bf16.mxu1 %v3923_v20 }
 0x705   :  { %v1653_v43 = vpop.permute.xlu1 %1652 }
 0x706   :  { %3034 = vmatmul.mubr.msk.bf16.vlgmr.msra.gmra.mxu0 %vm1664_vm14, %v1653_v43 }
 0x707   :  { %1737 = vmatpush1.bf16.msra.mxu0 %v1676_v41  ;;  %1754 = vmatprep.mubr.bf16.mxu0 %v3740_v30  ;;  %v3506_v30 = vld [vmem:[#allocation4 + $0xa4] ss:$8 sps:$4 sm:$0xff]  }
 0x708   :  { %2163 = vmatprep.subr.bf16.mxu0 %v3482_v31 }
 0x70e   :  { %3036 = vmatmul.mubr.msk.bf16.vlgmr.msra.gmra.mxu0 %vm1664_vm14, %v1653_v43 }
 0x70f   :  { %2164 = vmatpush1.bf16.msra.mxu0 %v3480_v44 }
 0x710   :  { %2165 = vmatprep.subr.bf16.mxu0 %v3485_v45  ;;  %v3576_v45 = vld [vmem:[#allocation6 + $0x98] sm:$0xff]  }
 0x713   :  { %2166 = vmatpush1.bf16.msra.mxu0 %v3483_v46  ;;  %v3577_v46 = vld [vmem:[#allocation6 + $0x58] sm:$0xff]  }
 0x714   :  { %2167 = vmatprep.subr.bf16.mxu0 %v3488_v47  ;;  %v3580_v47 = vld [vmem:[#allocation6 + $0x88] sm:$0xff]  }
 0x717   :  { %2168 = vmatpush1.bf16.msra.mxu0 %v3486_v48  ;;  %v3581_v48 = vld [vmem:[#allocation6 + $0x48] sm:$0xff]  }
 0x718   :  { %2169 = vmatprep.subr.bf16.mxu0 %v3494_v49  ;;  %v3582_v49 = vld [vmem:[#allocation6 + $0x80] sm:$0xff]  }
 0x71b   :  { %2170 = vmatpush1.bf16.msra.mxu0 %v3492_v50  ;;  %v3583_v50 = vld [vmem:[#allocation6 + $0x40] sm:$0xff]  }
 0x71c   :  { %2171 = vmatprep.subr.bf16.mxu0 %v3500_v51  ;;  %v3584_v51 = vld [vmem:[#allocation6 + $0x78] sm:$0xff]  }
 0x71f   :  { %2172 = vmatpush1.bf16.msra.mxu0 %v3498_v52  ;;  %v3585_v52 = vld [vmem:[#allocation6 + $0x38] sm:$0xff]  }
 0x720   :  { %2173 = vmatprep.subr.bf16.mxu0 %v3506_v30  ;;  %v3586_v30 = vld [vmem:[#allocation6 + $0x70] sm:$0xff]  }
 0x723   :  { %2174 = vmatpush1.bf16.msra.mxu0 %v3504_v53  ;;  %v3587_v53 = vld [vmem:[#allocation6 + $0x30] sm:$0xff]  }
 0x724   :  { %2175 = vmatprep.subr.bf16.mxu0 %v3512_v54  ;;  %v3588_v54 = vld [vmem:[#allocation6 + $0x68] sm:$0xff]  }
 0x727   :  { %2176 = vmatpush1.bf16.msra.mxu0 %v3510_v55  ;;  %v3589_v55 = vld [vmem:[#allocation6 + $0x28] sm:$0xff]  }
 0x728   :  { %2177 = vmatprep.subr.bf16.mxu0 %v3518_v56  ;;  %v3590_v56 = vld [vmem:[#allocation6 + $0x60] sm:$0xff]  }
 0x72b   :  { %2178 = vmatpush1.bf16.msra.mxu0 %v3516_v1  ;;  %v3591_v1 = vld [vmem:[#allocation6 + $0x20] sm:$0xff]  }
 0x72c   :  { %2179 = vmatprep.subr.bf16.mxu0 %v3524_v57  ;;  %v1831_v57 = vld [vmem:[%s4015_s5 + $0x20] sm:$0x3] }
 0x72f   :  { %2180 = vmatpush2.bf16.msra.mxu0 %v3522_v58 }
 0x730   :  { %2181 = vmatprep.subr.bf16.mxu0 %v3530_v59 }
 0x733   :  { %2182 = vmatpush2.bf16.msra.mxu0 %v3528_v60  ;;  %v1836_v60 = vrot.slane %v1831_v57, %v3852_v2 }
 0x734   :  { %2183 = vmatprep.subr.bf16.mxu0 %v3536_v61 }
 0x737   :  { %2184 = vmatpush2.bf16.msra.mxu0 %v3534_v62  ;;  %v1840_v62 = vrot.slane %v1831_v57, %v3858_v4 }
 0x738   :  { %2185 = vmatprep.subr.bf16.mxu0 %v3542_v63 }
 0x73b   :  { %2186 = vmatpush2.bf16.msra.mxu0 %v3540_v0 }
 0x73c   :  { %2187 = vmatprep.subr.bf16.mxu0 %v3548_v3 }
 0x73f   :  { %2188 = vmatpush2.bf16.msra.mxu0 %v3546_v5 }
 0x740   :  { %2189 = vmatprep.subr.bf16.mxu0 %v3554_v6 }
 0x743   :  { %2190 = vmatpush2.bf16.msra.mxu0 %v3552_v7 }
 0x744   :  { %2191 = vmatprep.subr.bf16.mxu0 %v3560_v8 }
 0x747   :  { %2192 = vmatpush2.bf16.msra.mxu0 %v3558_v10 }
 0x748   :  { %2193 = vmatprep.subr.bf16.mxu0 %v3566_v12 }
 0x74b   :  { %2194 = vmatpush2.bf16.msra.mxu0 %v3564_v14 }
 0x74c   :  { %3198 = vmatprep.subr.bf16.mxu0 %v3576_v45 }
 0x7c6   :  { %v1715_v26 = vpop.f32.mrf.mxu0 }
 0x7c7   :  { %v1716_v27 = vadd.f32 %v1715_v26, %v1634_v22 }
 0x7c8   :  { %v1717_v23 = vpop.f32.mrf.mxu0 }
 0x7c9   :  { %v1718_v28 = vadd.f32 %v1717_v23, %v1638_v25  ;;  %v1763_v34 = vpack.c.bf16 %v1716_v27, %v1716_v27 }
 0x7ca   :  { %v1719_v32 = vpop.f32.mrf.mxu0 }
 0x7cb   :  { %v1764_v33 = vpack.c.bf16 %v1718_v28, %v1718_v28 }
 0x7cc   :  { %v1720_v24 = vpop.f32.mrf.mxu0 }
 0x7cd   :  { %2195 = vmatprep.mubr.bf16.mxu0 %v1764_v33 }
 0x7ce   :  { %v1756_v37 = vpop.f32.mrf.mxu0  ;;  %2196 = vmatmul.mubr.bf16.vlgmr.msra.gmra.mxu0 %v1763_v34 }
 0x7cf   :  { %v1757_v29 = vadd.f32 %v1756_v37, %v1642_v35  ;;  %3199 = vmatpush3.bf16.msra.mxu0 %v3577_v46 }
 0x7d0   :  { %v1758_v38 = vpop.f32.mrf.mxu0  ;;  %3200 = vmatprep.subr.bf16.mxu0 %v3578_v40 }
 0x7d1   :  { %v1759_v39 = vadd.f32 %v1758_v38, %v1646_v36  ;;  %v1765_v43 = vpack.c.bf16 %v1757_v29, %v1757_v29 }
 0x7d2   :  { %v1760_v41 = vpop.f32.mrf.mxu0 }
 0x7d3   :  { %v1766_v31 = vpack.c.bf16 %v1759_v39, %v1759_v39  ;;  %3201 = vmatpush3.bf16.msra.mxu0 %v3579_v42 }
 0x7d4   :  { %v1761_v44 = vpop.f32.mrf.mxu0  ;;  %3202 = vmatprep.subr.bf16.mxu0 %v3580_v47  ;;  %v2245_v47 = vld [vmem:[%s4015_s5 + $0x22] sm:$0x3] }
 0x7d5   :  { %2236 = vmatprep.mubr.bf16.mxu1 %v1766_v31 }
 0x7d6   :  { %2237 = vmatmul.mubr.bf16.vlgmr.msra.gmra.mxu1 %v1765_v43 }
 0x7d7   :  { %3279 = vmatprep.mubr.msk.bf16.mxu1 %vm3739_vm0, %v3923_v20  ;;  %3203 = vmatpush3.bf16.msra.mxu0 %v3581_v48  ;;  %v2246_v48 = vld [vmem:[%s4015_s5 + $0x24] sm:$0x3] }
 0x7d8   :  { %3204 = vmatprep.subr.bf16.mxu0 %v3582_v49  ;;  %v2289_v49 = vrot.slane %v2245_v47, %v3852_v2 }
 0x7db   :  { %3205 = vmatpush3.bf16.msra.mxu0 %v3583_v50 }
 0x7dc   :  { %3206 = vmatprep.subr.bf16.mxu0 %v3584_v51 }
 0x7df   :  { %3207 = vmatpush3.bf16.msra.mxu0 %v3585_v52  ;;  %v2302_v52 = vrot.slane %v2246_v48, %v3852_v2  ;;  %v3592_v2 = vld [vmem:[#allocation7 + $0x150] sm:$0xff]  }
 0x7e0   :  { %3208 = vmatprep.subr.bf16.mxu0 %v3586_v30  ;;  %v2293_v30 = vrot.slane %v2245_v47, %v3858_v4  ;;  %3264 = vmatpush3.bf16.msra.mxu1 %v3592_v2  ;;  %v3602_v47 = vld [vmem:[#allocation7 + $0x160] sm:$0xff]  }
 0x7e1   :  { %3265 = vmatprep.subr.bf16.mxu1 %v3923_v20 }
 0x7e3   :  { %3209 = vmatpush3.bf16.msra.mxu0 %v3587_v53 }
 0x7e4   :  { %3210 = vmatprep.subr.bf16.mxu0 %v3588_v54 }
 0x7e7   :  { %3211 = vmatpush3.bf16.msra.mxu0 %v3589_v55 }
 0x7e8   :  { %3212 = vmatprep.subr.bf16.mxu0 %v3590_v56  ;;  %v2306_v56 = vrot.slane %v2246_v48, %v3858_v4  ;;  %v3593_v4 = vld [vmem:[#allocation7 + $0x148] sm:$0xff]   ;;  %v3603_v48 = vld [vmem:[#allocation7 + $0x158] sm:$0xff]  }
 0x7e9   :  { %3266 = vmatpush3.bf16.msra.mxu1 %v3593_v4 }
 0x7ea   :  { %3267 = vmatprep.subr.bf16.mxu1 %v3923_v20 }
 0x7eb   :  { %3213 = vmatpush3.bf16.msra.mxu0 %v3591_v1 }
 0x7ec   :  { %3283 = vmatprep.subr.bf16.mxu0 %v3923_v20 }
 0x88e   :  { %v2197_v58 = vpop.f32.mrf.mxu0 }
 0x88f   :  { %v2198_v0 = vadd.f32 %v2197_v58, %v1836_v60 }
 0x890   :  { %v2199_v59 = vpop.f32.mrf.mxu0 }
 0x891   :  { %v2200_v5 = vadd.f32 %v2199_v59, %v1840_v62 }
 0x892   :  { %v2201_v61 = vpop.f32.mrf.mxu0 }
 0x894   :  { %v2202_v63 = vpop.f32.mrf.mxu0 }
 0x896   :  { %v2238_v3 = vpop.f32.mrf.mxu1 }
 0x897   :  { %v2239_v6 = vadd.f32 %v2238_v3, %v2198_v0  ;;  %v3594_v3 = vld [vmem:[#allocation7 + $0x140] sm:$0xff]  }
 0x898   :  { %v2240_v7 = vpop.f32.mrf.mxu1  ;;  %3268 = vmatpush3.bf16.msra.mxu1 %v3594_v3 }
 0x899   :  { %v2247_v8 = vrot.slane %v2239_v6, 4  ;;  %v2241_v9 = vadd.f32 %v2240_v7, %v2200_v5  ;;  %3269 = vmatprep.subr.bf16.mxu1 %v3923_v20  ;;  %v3595_v5 = vld [vmem:[#allocation7 + $0x138] sm:$0xff]   ;;  %v3597_v7 = vld [vmem:[#allocation7 + $0x128] sm:$0xff]  }
 0x89a   :  { %v2242_v10 = vpop.f32.mrf.mxu1 }
 0x89b   :  { %v2248_v11 = vadd.f32 %v2247_v8, %v2239_v6  ;;  %v2253_v12 = vrot.slane %v2241_v9, 4  ;;  %v3598_v8 = vld [vmem:[#allocation7 + $0x120] sm:$0xff]  }
 0x89c   :  { %v2243_v13 = vpop.f32.mrf.mxu1  ;;  %3270 = vmatpush3.bf16.msra.mxu1 %v3595_v5 }
 0x89d   :  { %v2249_v14 = vrot.slane %v2248_v11, 2  ;;  %v2254_v15 = vadd.f32 %v2253_v12, %v2241_v9  ;;  %3271 = vmatprep.subr.bf16.mxu1 %v3923_v20 }
 0x89f   :  { %v2250_v16 = vadd.f32 %v2249_v14, %v2248_v11  ;;  %v2255_v17 = vrot.slane %v2254_v15, 2  ;;  %v3101_v11 = vld [vmem:[%s4015_s5 + $0x26] ss:$0 sm:$0xff] }
 0x8a1   :  { %v2251_v18 = vrot.slane %v2250_v16, 1  ;;  %v2256_v19 = vadd.f32 %v2255_v17, %v2254_v15 }
 0x8a3   :  { %v2252_v21 = vadd.f32 %v2251_v18, %v2250_v16  ;;  %v2257_v22 = vrot.slane %v2256_v19, 1 }
 0x8a5   :  { %v2259_v25 = vmul.f32 0.125, %v2252_v21  ;;  %v2258_v26 = vadd.f32 %v2257_v22, %v2256_v19 }
 0x8a7   :  { %v2261_v27 = vsub.f32 %v2239_v6, %v2259_v25  ;;  %v2260_v23 = vmul.f32 0.125, %v2258_v26  ;;  %v3596_v6 = vld [vmem:[#allocation7 + $0x130] sm:$0xff]  }
 0x8a8   :  { %3272 = vmatpush3.bf16.msra.mxu1 %v3596_v6 }
 0x8a9   :  { %v2263_v28 = vmul.f32 %v2261_v27, %v2261_v27  ;;  %v2262_v32 = vsub.f32 %v2241_v9, %v2260_v23  ;;  %3273 = vmatprep.subr.bf16.mxu1 %v3923_v20  ;;  %v3599_v9 = vld [vmem:[#allocation7 + $0x118] sm:$0xff]  }
 0x8ab   :  { %v2265_v33 = vrot.slane %v2263_v28, 4  ;;  %v2264_v34 = vmul.f32 %v2262_v32, %v2262_v32 }
 0x8ac   :  { %3274 = vmatpush3.bf16.msra.mxu1 %v3597_v7 }
 0x8ad   :  { %v2266_v24 = vadd.f32 %v2265_v33, %v2263_v28  ;;  %v2271_v35 = vrot.slane %v2264_v34, 4  ;;  %3275 = vmatprep.subr.bf16.mxu1 %v3923_v20 }
 0x8af   :  { %v2267_v36 = vrot.slane %v2266_v24, 2  ;;  %v2272_v37 = vadd.f32 %v2271_v35, %v2264_v34 }
 0x8b0   :  { %3276 = vmatpush3.bf16.msra.mxu1 %v3598_v8 }
 0x8b1   :  { %v2268_v29 = vadd.f32 %v2267_v36, %v2266_v24  ;;  %v2273_v38 = vrot.slane %v2272_v37, 2  ;;  %3277 = vmatprep.subr.bf16.mxu1 %v3923_v20 }
 0x8b3   :  { %v2269_v39 = vrot.slane %v2268_v29, 1  ;;  %v2274_v41 = vadd.f32 %v2273_v38, %v2272_v37  ;;  %v3118_v38 = vld [vmem:[%s4015_s5 + $0x27] ss:$0 sm:$0xff] }
 0x8b4   :  { %3278 = vmatpush3.bf16.msra.mxu1 %v3599_v9 }
 0x8b5   :  { %v2270_v31 = vadd.f32 %v2269_v39, %v2268_v29  ;;  %v2275_v43 = vrot.slane %v2274_v41, 1  ;;  %3295 = vmatprep.subr.bf16.mxu1 %v3923_v20 }
 0x8b7   :  { %v2277_v44 = vmul.f32 0.125, %v2270_v31  ;;  %v2276_v45 = vadd.f32 %v2275_v43, %v2274_v41  ;;  %v3119_v41 = vld [vmem:[%s4015_s5 + $0x28] ss:$0 sm:$0xff] }
 0x8b9   :  { %v2279_v46 = vadd.f32 1e-05, %v2277_v44  ;;  %v2278_v40 = vmul.f32 0.125, %v2276_v45 }
 0x8bb   :  { %3626 = vrsqrt.f32 %v2279_v46  ;;  %v2280_v42 = vadd.f32 1e-05, %v2278_v40  ;;  %v3600_v40 = vld [vmem:[#allocation7 + $0x170] sm:$0xff]  }
 0x8bd   :  { %3628 = vrsqrt.f32 %v2280_v42  ;;  %v3601_v42 = vld [vmem:[#allocation7 + $0x168] sm:$0xff]  }
 0x8c8   :  { %v3627_v50 = vpop.eup %3626 }
 0x8c9   :  { %v2283_v51 = vmul.f32 %v3627_v50, %v2261_v27 }
 0x8ca   :  { %v3629_v53 = vpop.eup %3628 }
 0x8cb   :  { %v2296_v54 = vmul.f32 %v2289_v49, %v2283_v51  ;;  %v2284_v55 = vmul.f32 %v3629_v53, %v2262_v32  ;;  %v3128_v49 = vld [vmem:[%s4015_s5 + $0x29] ss:$0 sm:$0xff] }
 0x8cd   :  { %v2309_v1 = vadd.f32 %v2302_v52, %v2296_v54  ;;  %v2297_v57 = vmul.f32 %v2293_v30, %v2284_v55 }
 0x8cf   :  { %v2310_v58 = vadd.f32 %v2306_v56, %v2297_v57  ;;  %vm2311_vm15 = vcmp.gt.f32.partialorder %v2309_v1, 0.0  ;;  %v2313_v59 = vmul.f32 0.01, %v2309_v1 }
 0x8d1   :  { %vm2312_vm3 = vcmp.gt.f32.partialorder %v2310_v58, 0.0  ;;  %v2314_v60 = vmul.f32 0.01, %v2310_v58  ;;  %v2315_v61 = vsel %vm2311_vm15, %v2309_v1, %v2313_v59 }
 0x8d2   :  { %v2317_v0 = vpack.c.bf16 %v2315_v61, %v2315_v61 }
 0x8d3   :  { %v2316_v62 = vsel %vm2312_vm3, %v2310_v58, %v2314_v60 }
 0x8d4   :  { %v2318_v63 = vpack.c.bf16 %v2316_v62, %v2316_v62 }
 0x8d6   :  { %2486 = vmatprep.mubr.bf16.mxu0 %v2318_v63 }
 0x8d7   :  { %2487 = vmatmul.mubr.bf16.vlgmr.msra.gmra.mxu0 %v2317_v0 }
 0x8d8   :  { %3291 = vmatprep.mubr.msk.bf16.mxu0 %vm3739_vm0, %v3923_v20  ;;  %3284 = vmatpush3.bf16.msra.mxu0 %v3600_v40 }
 0x8d9   :  { %3285 = vmatprep.subr.bf16.mxu0 %v3923_v20 }
 0x8dc   :  { %3286 = vmatpush3.bf16.msra.mxu0 %v3601_v42 }
 0x8dd   :  { %3287 = vmatprep.subr.bf16.mxu0 %v3923_v20 }
 0x8e0   :  { %3288 = vmatpush3.bf16.msra.mxu0 %v3602_v47  ;;  %v3137_v47 = vld [vmem:[%s4015_s5 + $0x2d] ss:$0 sm:$0xff] }
 0x8e1   :  { %3289 = vmatprep.subr.bf16.mxu0 %v3923_v20 }
 0x8e4   :  { %3290 = vmatpush3.bf16.msra.mxu0 %v3603_v48 }
 0x997   :  { %v3214_v10 = vpop.f32.mrf.mxu0 }
 0x999   :  { %v3215_v12 = vpop.f32.mrf.mxu0 }
 0x99a   :  { %v3216_v13 = vadd.f32 %v3215_v12, %v3214_v10  ;;  %v3129_v10 = vld [vmem:[%s4015_s5 + $0x2a] ss:$0 sm:$0xff]  ;;  %v3130_v12 = vld [vmem:[%s4015_s5 + $0x2b] ss:$0 sm:$0xff] }
 0x99b   :  { %v3217_v14 = vpop.f32.mrf.mxu0 }
 0x99c   :  { %v2489_v15 = vadd.f32 %v3216_v13, %v3101_v11 }
 0x99d   :  { %v3218_v16 = vpop.f32.mrf.mxu0 }
 0x99e   :  { %v2496_v17 = vrot.slane %v2489_v15, 4 }
 0x9a0   :  { %v2497_v18 = vadd.f32 %v2496_v17, %v2489_v15 }
 0x9a2   :  { %v2498_v19 = vrot.slane %v2497_v18, 2 }
 0x9a4   :  { %v2499_v21 = vadd.f32 %v2498_v19, %v2497_v18  ;;  %v3604_v18 = vld [vmem:[#allocation7 + $0x180] sm:$0xff]   ;;  %v3605_v19 = vld [vmem:[#allocation7 + $0x178] sm:$0xff]  }
 0x9a6   :  { %v2500_v22 = vrot.slane %v2499_v21, 1 }
 0x9a8   :  { %v2501_v25 = vadd.f32 %v2500_v22, %v2499_v21  ;;  %v3136_v21 = vld [vmem:[%s4015_s5 + $0x2c] ss:$0 sm:$0xff] }
 0x9aa   :  { %v2502_v26 = vmul.f32 0.125, %v2501_v25 }
 0x9ac   :  { %v2503_v27 = vsub.f32 %v2489_v15, %v2502_v26 }
 0x9ae   :  { %v2504_v23 = vmul.f32 %v2503_v27, %v2503_v27 }
 0x9b0   :  { %v2505_v28 = vrot.slane %v2504_v23, 4 }
 0x9b2   :  { %v2506_v32 = vadd.f32 %v2505_v28, %v2504_v23 }
 0x9b4   :  { %v2507_v33 = vrot.slane %v2506_v32, 2 }
 0x9b6   :  { %v2508_v34 = vadd.f32 %v2507_v33, %v2506_v32 }
 0x9b8   :  { %v2509_v24 = vrot.slane %v2508_v34, 1 }
 0x9ba   :  { %v2510_v35 = vadd.f32 %v2509_v24, %v2508_v34 }
 0x9bc   :  { %v2511_v36 = vmul.f32 0.125, %v2510_v35 }
 0x9be   :  { %v2512_v37 = vadd.f32 1e-05, %v2511_v36 }
 0x9c0   :  { %3630 = vrsqrt.f32 %v2512_v37 }
 0x9cd   :  { %v3631_v29 = vpop.eup %3630 }
 0x9ce   :  { %v2514_v39 = vmul.f32 %v3631_v29, %v2503_v27 }
 0x9d0   :  { %v2521_v31 = vmul.f32 %v3118_v38, %v2514_v39 }
 0x9d2   :  { %v2528_v43 = vadd.f32 %v3119_v41, %v2521_v31 }
 0x9d4   :  { %vm2529_vm5 = vcmp.gt.f32.partialorder %v2528_v43, 0.0  ;;  %v2530_v44 = vmul.f32 0.01, %v2528_v43 }
 0x9d6   :  { %v2531_v45 = vsel %vm2529_vm5, %v2528_v43, %v2530_v44 }
 0x9d7   :  { %v2532_v46 = vpack.c.bf16 %v2531_v45, %v2531_v45 }
 0x9d9   :  { %3280 = vmatmul.mubr.bf16.vlgmr.msra.gmra.mxu1 %v2532_v46 }
 0x9da   :  { %3299 = vmatprep.mubr.msk.bf16.mxu1 %vm3739_vm0, %v3923_v20  ;;  %3296 = vmatpush3.bf16.msra.mxu1 %v3604_v18 }
 0x9db   :  { %3297 = vmatprep.subr.bf16.mxu1 %v3923_v20 }
 0x9de   :  { %3298 = vmatpush3.bf16.msra.mxu1 %v3605_v19 }
 0xa99   :  { %v2631_v50 = vpop.f32.mrf.mxu1 }
 0xa9a   :  { %v2644_v51 = vadd.f32 %v3128_v49, %v2631_v50  ;;  %v3138_v49 = vld [vmem:[%s4015_s5 + $0x2e] ss:$0 sm:$0xff] }
 0xa9b   :  { %v3281_v52 = vpop.f32.mrf.mxu1 }
 0xa9c   :  { %v2647_v30 = vsel %vm253_vm4, %v2644_v51, 0.0 }
 0xa9d   :  { %v2648_v53 = vrot.slane %v2647_v30, 4  ;;  %v2634_v54 = vpop.f32.mrf.mxu1 }
 0xa9e   :  { %v3142_v54 = vld [vmem:[%s4015_s5 + $0x2f] ss:$0 sm:$0xff] }
 0xa9f   :  { %v2649_v55 = vadd.f32 %v2648_v53, %v2647_v30  ;;  %v3282_v56 = vpop.f32.mrf.mxu1 }
 0xaa1   :  { %v2650_v1 = vrot.slane %v2649_v55, 2 }
 0xaa3   :  { %v2651_v57 = vadd.f32 %v2650_v1, %v2649_v55 }
 0xaa5   :  { %v2652_v58 = vrot.slane %v2651_v57, 1 }
 0xaa7   :  { %v2653_v59 = vadd.f32 %v2652_v58, %v2651_v57 }
 0xaa9   :  { %v2654_v60 = vmul.f32 0.125, %v2653_v59 }
 0xaab   :  { %v2655_v61 = vsub.f32 %v2644_v51, %v2654_v60 }
 0xaad   :  { %v2656_v62 = vmul.f32 %v2655_v61, %v2655_v61 }
 0xaaf   :  { %v2657_v63 = vsel %vm253_vm4, %v2656_v62, 0.0 }
 0xab0   :  { %v2658_v0 = vrot.slane %v2657_v63, 4 }
 0xab2   :  { %v2659_v2 = vadd.f32 %v2658_v0, %v2657_v63  ;;  %v2886_v63 = vpop.permute.xlu1 %2885 }
 0xab4   :  { %v2660_v4 = vrot.slane %v2659_v2, 2 }
 0xab6   :  { %v2661_v3 = vadd.f32 %v2660_v4, %v2659_v2 }
 0xab8   :  { %v2662_v5 = vrot.slane %v2661_v3, 1 }
 0xaba   :  { %v2663_v6 = vadd.f32 %v2662_v5, %v2661_v3 }
 0xabc   :  { %v2664_v7 = vmul.f32 0.125, %v2663_v6 }
 0xabe   :  { %v2665_v8 = vadd.f32 1e-05, %v2664_v7 }
 0xac0   :  { %3632 = vrsqrt.f32 %v2665_v8 }
 0xacd   :  { %v3633_v9 = vpop.eup %3632 }
 0xace   :  { %v2667_v11 = vmul.f32 %v3633_v9, %v2655_v61 }
 0xad0   :  { %v2674_v13 = vmul.f32 %v3129_v10, %v2667_v11 }
 0xad2   :  { %v2681_v14 = vadd.f32 %v3130_v12, %v2674_v13 }
 0xad4   :  { %vm2682_vm0 = vcmp.gt.f32.partialorder %v2681_v14, 0.0  ;;  %v2683_v15 = vmul.f32 0.01, %v2681_v14 }
 0xad6   :  { %v2684_v16 = vsel %vm2682_vm0, %v2681_v14, %v2683_v15 }
 0xad7   :  { %v2685_v17 = vpack.c.bf16 %v2684_v16, %v2684_v16 }
 0xad9   :  { %3292 = vmatmul.mubr.msk.bf16.vlgmr.msra.gmra.mxu0 %vm253_vm4, %v2685_v17 }
 0xb99   :  { %v2755_v22 = vpop.f32.mrf.mxu0 }
 0xb9a   :  { %v2768_v25 = vadd.f32 %v3136_v21, %v2755_v22 }
 0xb9b   :  { %v3293_v26 = vpop.f32.mrf.mxu0 }
 0xb9c   :  { %v2771_v27 = vsel %vm143_vm2, %v2768_v25, 0.0 }
 0xb9d   :  { %v2772_v23 = vrot.slane %v2771_v27, 4  ;;  %v2758_v28 = vpop.f32.mrf.mxu0 }
 0xb9f   :  { %v2773_v32 = vadd.f32 %v2772_v23, %v2771_v27  ;;  %v3294_v33 = vpop.f32.mrf.mxu0 }
 0xba1   :  { %v2774_v34 = vrot.slane %v2773_v32, 2 }
 0xba3   :  { %v2775_v24 = vadd.f32 %v2774_v34, %v2773_v32 }
 0xba5   :  { %v2776_v35 = vrot.slane %v2775_v24, 1 }
 0xba7   :  { %v2777_v36 = vadd.f32 %v2776_v35, %v2775_v24 }
 0xba9   :  { %v2778_v20 = vmul.f32 0.125, %v2777_v36 }
 0xbab   :  { %v2779_v37 = vsub.f32 %v2768_v25, %v2778_v20 }
 0xbad   :  { %v2780_v29 = vmul.f32 %v2779_v37, %v2779_v37 }
 0xbaf   :  { %v2781_v38 = vsel %vm143_vm2, %v2780_v29, 0.0 }
 0xbb0   :  { %v2782_v39 = vrot.slane %v2781_v38, 4 }
 0xbb2   :  { %v2783_v41 = vadd.f32 %v2782_v39, %v2781_v38 }
 0xbb4   :  { %v2784_v31 = vrot.slane %v2783_v41, 2 }
 0xbb6   :  { %v2785_v43 = vadd.f32 %v2784_v31, %v2783_v41 }
 0xbb8   :  { %v2786_v44 = vrot.slane %v2785_v43, 1 }
 0xbba   :  { %v2787_v45 = vadd.f32 %v2786_v44, %v2785_v43 }
 0xbbc   :  { %v2788_v46 = vmul.f32 0.125, %v2787_v45 }
 0xbbe   :  { %v2789_v40 = vadd.f32 1e-05, %v2788_v46 }
 0xbc0   :  { %3634 = vrsqrt.f32 %v2789_v40 }
 0xbcd   :  { %v3635_v42 = vpop.eup %3634 }
 0xbce   :  { %v2791_v48 = vmul.f32 %v3635_v42, %v2779_v37 }
 0xbd0   :  { %v2798_v50 = vmul.f32 %v3137_v47, %v2791_v48 }
 0xbd2   :  { %v2805_v51 = vadd.f32 %v3138_v49, %v2798_v50 }
 0xbd4   :  { %vm2806_vm4 = vcmp.gt.f32.partialorder %v2805_v51, 0.0  ;;  %v2807_v52 = vmul.f32 0.01, %v2805_v51 }
 0xbd6   :  { %v2808_v30 = vsel %vm2806_vm4, %v2805_v51, %v2807_v52 }
 0xbd7   :  { %v2809_v53 = vpack.c.bf16 %v2808_v30, %v2808_v30 }
 0xbd9   :  { %3300 = vmatmul.mubr.msk.bf16.vlgmr.msra.gmra.mxu1 %vm143_vm2, %v2809_v53 }
 0xc99   :  { %v2863_v55 = vpop.f32.mrf.mxu1 }
 0xc9a   :  { %v2876_v56 = vadd.f32 %v3142_v54, %v2863_v55 }
 0xc9b   :  { %v3301_v1 = vpop.f32.mrf.mxu1 }
 0xc9c   :  { %v3143_v57 = vmul.f32 -1.442695, %v2876_v56 }
 0xc9d   :  { %v2866_v58 = vpop.f32.mrf.mxu1 }
 0xc9e   :  { %3636 = vpow2.f32 %v3143_v57 }
 0xc9f   :  { %v3302_v59 = vpop.f32.mrf.mxu1 }
 0xcab   :  { %v3637_v60 = vpop.eup %3636 }
 0xcac   :  { %v2880_v61 = vadd.f32 1.0, %v3637_v60 }
 0xcae   :  { %3638 = vrcp.f32 %v2880_v61 }
 0xcbb   :  { %v3639_v62 = vpop.eup %3638 }
 0xcbc   :  { %2884 = vst.msk [vmem:[%s4016_s6] sm:$0xff] %vm89_vm1, %v3639_v62 }
 0xcbd   :  { %2889 = vst.msk [vmem:[%s4016_s6] sm:$0xff] %vm2888_vm6, %v2886_v63 }
 0xcbe   :  { %2894 = vsyncpa [#allocation3], 1 }
 0xcbf   :  { %2895 = vsyncpa [#allocation5], 1 }
 0xcc0   :  { %2896 = vsyncpa [#allocation8], 1 }

</bundles_post_ra>
